<compile_context>
chip_gen: v7x
topology: tpu7x:2x2x1
jax: 0.10.0
libtpu: 0.0.40
codegen_flags: <defaults>
</compile_context>

<pallas_src>
import functools

import jax
import jax.numpy as jnp
from jax.experimental import pallas as pl
from jax.experimental.pallas import tpu as pltpu


def _round_up(x: int, m: int) -> int:
    return ((x + m - 1) // m) * m


def factor_decoder_kernel(
    feats_t_ref,   # (H_pad, TM)   feats^T column tile (+ ones bias row at index H), mxu dtype
    aux_ref,       # (B+1, TM)     rows 0..B-1: f32 one-hot batch selector; row B: noise z
    lhs_t_ref,     # (R_pad, H_pad) stacked [w_lin^T (+bias col, ones passthrough) ; w_eff rows]
    w_ms_t_ref,    # (2, H_pad)    [w_mean^T ; w_std^T] with b_mean / b_std folded into bias col
    out_ref,       # (1, TM)
    *,
    num_batch: int,
):
    feats_t = feats_t_ref[...]                                   # (H_pad, TM)
    h_pad = feats_t.shape[0]

    # One MXU pass over feats^T computes BOTH the hidden pre-activations and
    # the per-batch beta rows (beta/factor einsum folded into w_eff rows).
    full = jnp.dot(lhs_t_ref[...], feats_t,
                   preferred_element_type=jnp.float32)           # (R_pad, TM) f32

    hidden_t = full[:h_pad, :]                                   # (H_pad, TM)
    beta_t = full[h_pad:h_pad + num_batch, :]                    # (B, TM)

    hidden_t = jnp.maximum(hidden_t, 0.01 * hidden_t)            # LeakyReLU(0.01)

    # mean / std_pre projections.  Small LHS (2 rows); cast hidden to the MXU
    # dtype for a single bf16 push (no-op on the f32 verification path).
    # TODO(synk): if profiling shows this stationary reload binding the MXU at
    #   small H_pad, switch to a VPU broadcast-multiply + sublane reduce.
    ms = jnp.dot(w_ms_t_ref[...], hidden_t.astype(w_ms_t_ref.dtype),
                 preferred_element_type=jnp.float32)             # (2, TM)

    aux = aux_ref[...]                                           # (B+1, TM) f32
    sel = aux[:num_batch, :]                                     # one-hot batch membership
    z = aux[num_batch:num_batch + 1, :]                          # standard normal sample

    y = jnp.sum(beta_t * sel, axis=0, keepdims=True)             # (1, TM)
    mean = ms[0:1, :]
    std = jax.nn.softplus(ms[1:2, :])   # softplus >= 0 -> clip(min=0) is redundant

    # torch.normal(mean, std) == mean + std * z
    out_ref[...] = y + mean + std * z


def factor_decoder(feats, facts, noise, params, *, tile_m=512,
                   mxu_dtype=jnp.bfloat16):
    """feats: (B, S, H), facts: (B, K), noise: (B, S) ~ N(0,1).  Returns (B, S)."""
    B, S, H = feats.shape
    (w_beta, b_beta, w_lin, b_lin, w_mean, b_mean, w_std, b_std) = params

    f32 = jnp.float32
    M = B * S
    tile_m = _round_up(min(tile_m, _round_up(M, 128)), 128)
    M_pad = _round_up(M, tile_m)
    H_pad = _round_up(H + 1, 128)     # +1 row reserved for the bias ("ones") row
    ONE = H                           # index of the homogeneous ones-row / column

    # ---- feats^T, zero-padded, with a ones-row carrying all biases ----------
    feats_t = jnp.zeros((H_pad, M_pad), f32)
    feats_t = feats_t.at[:H, :M].set(feats.reshape(M, H).T)
    feats_t = feats_t.at[ONE, :].set(1.0)
    feats_t = feats_t.astype(mxu_dtype)

    # ---- aux rows: one-hot batch selector + noise row -----------------------
    col_batch = jnp.arange(M_pad, dtype=jnp.int32) // S            # padded cols -> id >= B
    sel = (col_batch[None, :] == jnp.arange(B, dtype=jnp.int32)[:, None]).astype(f32)
    noise_row = jnp.zeros((M_pad,), f32).at[:M].set(noise.reshape(M))
    aux = jnp.concatenate([sel, noise_row[None, :]], axis=0)       # (B+1, M_pad)

    # ---- stacked LHS: [w_lin^T (+bias) ; w_eff rows (+bias)] ----------------
    # w_eff[b, h] = sum_k facts[b, k] * w_beta[h, k];  c[b] = facts[b] . b_beta
    hi = jax.lax.Precision.HIGHEST
    w_eff = jnp.dot(facts, w_beta.T, precision=hi)                 # (B, H)
    c = jnp.dot(facts, b_beta[0], precision=hi)                    # (B,)

    R_pad = _round_up(H_pad + B, 16)
    lhs = jnp.zeros((R_pad, H_pad), f32)
    lhs = lhs.at[:H, :H].set(w_lin.T)
    lhs = lhs.at[:H, ONE].set(b_lin[0])
    lhs = lhs.at[ONE, ONE].set(1.0)              # propagate ones-row (LeakyReLU(1)=1)
    lhs = lhs.at[H_pad:H_pad + B, :H].set(w_eff)
    lhs = lhs.at[H_pad:H_pad + B, ONE].set(c)
    lhs = lhs.astype(mxu_dtype)

    # ---- [w_mean^T ; w_std^T] with their biases folded ----------------------
    w_ms = jnp.zeros((2, H_pad), f32)
    w_ms = w_ms.at[0, :H].set(w_mean[:, 0]).at[0, ONE].set(b_mean[0, 0])
    w_ms = w_ms.at[1, :H].set(w_std[:, 0]).at[1, ONE].set(b_std[0, 0])
    w_ms = w_ms.astype(mxu_dtype)

    # ---- VMEM budget (explicit, valid on v5e/v6e/v7x) ------------------------
    isz = jnp.dtype(mxu_dtype).itemsize
    est = (2 * H_pad * tile_m * isz          # feats^T tile, double-buffered
           + 2 * (B + 1) * tile_m * 4        # aux tile, double-buffered
           + 2 * R_pad * H_pad * isz         # stacked LHS (resident weights)
           + 2 * 2 * H_pad * isz             # w_ms
           + 2 * tile_m * 4                  # output tile
           + R_pad * tile_m * 4              # f32 matmul result
           + 2 * H_pad * tile_m * 4)         # hidden / cast temporaries
    vmem_limit = int(min(64 * 1024 * 1024, max(32 * 1024 * 1024, 2 * est)))

    kernel = functools.partial(factor_decoder_kernel, num_batch=B)

    out = pl.pallas_call(
        kernel,
        out_shape=jax.ShapeDtypeStruct((1, M_pad), f32),
        grid=(M_pad // tile_m,),
        in_specs=[
            pl.BlockSpec((H_pad, tile_m), lambda j: (0, j)),   # feats^T tile
            pl.BlockSpec((B + 1, tile_m), lambda j: (0, j)),   # one-hot + noise
            pl.BlockSpec((R_pad, H_pad), lambda j: (0, 0)),    # stacked LHS (grid-constant)
            pl.BlockSpec((2, H_pad), lambda j: (0, 0)),        # [w_mean^T; w_std^T]
        ],
        out_specs=pl.BlockSpec((1, tile_m), lambda j: (0, j)),
        compiler_params=pltpu.CompilerParams(
            dimension_semantics=("parallel",),
            vmem_limit_bytes=vmem_limit),
    )(feats_t, aux, lhs, w_ms)

    return out[0, :M].reshape(B, S)


def make_params(key, num_facts, num_feats):
    """Deterministic synthetic parameters (weights stored as (in, out))."""
    ks = jax.random.split(key, 8)
    scale = 0.1
    w_beta = scale * jax.random.normal(ks[0], (num_feats, num_facts), jnp.float32)
    b_beta = scale * jax.random.normal(ks[1], (1, num_facts), jnp.float32)
    w_lin = scale * jax.random.normal(ks[2], (num_feats, num_feats), jnp.float32)
    b_lin = scale * jax.random.normal(ks[3], (1, num_feats), jnp.float32)
    w_mean = scale * jax.random.normal(ks[4], (num_feats, 1), jnp.float32)
    b_mean = scale * jax.random.normal(ks[5], (1, 1), jnp.float32)
    w_std = scale * jax.random.normal(ks[6], (num_feats, 1), jnp.float32)
    b_std = scale * jax.random.normal(ks[7], (1, 1), jnp.float32)
    return (w_beta, b_beta, w_lin, b_lin, w_mean, b_mean, w_std, b_std)


def reference(feats, facts, noise, params):
    """Pure-JAX reference mirroring the PyTorch forward (same noise sample)."""
    (w_beta, b_beta, w_lin, b_lin, w_mean, b_mean, w_std, b_std) = params
    beta = feats @ w_beta + b_beta                              # (B, S, K)
    y = jnp.einsum('bsk,bk->bs', beta, facts)                   # (B, S)
    h = feats @ w_lin + b_lin
    h = jnp.where(h > 0, h, 0.01 * h)
    mean = (h @ w_mean + b_mean)[..., 0]                        # (B, S)
    std = jnp.maximum(jax.nn.softplus((h @ w_std + b_std)[..., 0]), 0.0)
    return y + mean + std * noise


if __name__ == "__main__":
    # Full-precision matmuls for the f32 verification path / the reference.
    jax.config.update("jax_default_matmul_precision", "highest")

    B, S, H, K = 2, 8, 32, 4   # batch, stocks, num_feats, num_facts

    key = jax.random.PRNGKey(0)
    k_feats, k_facts, k_noise, k_params = jax.random.split(key, 4)

    feats = jax.random.normal(k_feats, (B, S, H), jnp.float32)
    facts = jax.random.normal(k_facts, (B, K), jnp.float32)
    # Standard-normal sample reproducing torch.normal(mean, std) = mean + std * z
    noise = jax.random.normal(k_noise, (B, S), jnp.float32)

    params = make_params(k_params, K, H)
    ref = reference(feats, facts, noise, params)

    # Tight structural check on the full-f32 path.
    out_f32 = jax.block_until_ready(
        factor_decoder(feats, facts, noise, params, mxu_dtype=jnp.float32))
    assert out_f32.shape == (B, S)
    assert jnp.allclose(out_f32, ref, atol=1e-4, rtol=1e-4), (out_f32, ref)

    # Production path: bf16 MXU operands, f32 accumulation + f32 epilogue.
    out_bf16 = jax.block_until_ready(
        factor_decoder(feats, facts, noise, params, mxu_dtype=jnp.bfloat16))
    assert out_bf16.shape == (B, S)
    assert jnp.allclose(out_bf16, ref, atol=5e-2, rtol=5e-2), (out_bf16, ref)

    print("KERNEL_OK")
</pallas_src>

<mosaic_0001>
module attributes {stable_mosaic.version = 11 : i64} {
  func.func @factor_decoder_kernel(%arg0: i32, %arg1: memref<128x128xf32, #tpu.memory_space<vmem>>, %arg2: memref<3x128xf32, #tpu.memory_space<vmem>>, %arg3: memref<144x128xf32, #tpu.memory_space<vmem>>, %arg4: memref<2x128xf32, #tpu.memory_space<vmem>>, %arg5: memref<1x128xf32, #tpu.memory_space<vmem>>) attributes {dimension_semantics = [#tpu.dimension_semantics<parallel>], iteration_bounds = array<i64: 1>, scalar_prefetch = 0 : i64, scratch_operands = 0 : i64, tpu.core_type = #tpu.core_type<tc>, window_params = [{transform_indices = @transform_0, window_bounds = array<i64: 128, 128>}, {transform_indices = @transform_1, window_bounds = array<i64: 3, 128>}, {pipeline_mode = #tpu.pipeline_mode<synchronous>, transform_indices = @transform_2, window_bounds = array<i64: 144, 128>}, {pipeline_mode = #tpu.pipeline_mode<synchronous>, transform_indices = @transform_3, window_bounds = array<i64: 2, 128>}, {transform_indices = @transform_4, window_bounds = array<i64: 1, 128>}]} {
    %c0 = arith.constant 0 : index
    %c0_0 = arith.constant 0 : index
    %0 = vector.load %arg1[%c0, %c0_0] : memref<128x128xf32, #tpu.memory_space<vmem>>, vector<128x128xf32>
    %c0_1 = arith.constant 0 : index
    %c0_2 = arith.constant 0 : index
    %1 = vector.load %arg3[%c0_1, %c0_2] : memref<144x128xf32, #tpu.memory_space<vmem>>, vector<144x128xf32>
    %cst = arith.constant dense<0.000000e+00> : vector<144x128xf32>
    %2 = tpu.matmul %1, %0, %cst {dimension_numbers = #tpu.dot_dimension_numbers<[1], [0], [0], [1], [0, 0, 1, 1], [], []>, precision = #tpu.contract_precision<fp32>} : vector<144x128xf32>, vector<128x128xf32>, vector<144x128xf32> -> vector<144x128xf32>
    %3 = vector.extract_strided_slice %2 {offsets = [0, 0], sizes = [128, 128], strides = [1, 1]} : vector<144x128xf32> to vector<128x128xf32>
    %4 = vector.extract_strided_slice %2 {offsets = [128, 0], sizes = [2, 128], strides = [1, 1]} : vector<144x128xf32> to vector<2x128xf32>
    %cst_3 = arith.constant 0.00999999977 : f32
    %5 = vector.broadcast %cst_3 : f32 to vector<128x128xf32>
    %6 = arith.mulf %5, %3 : vector<128x128xf32>
    %7 = arith.maximumf %3, %6 : vector<128x128xf32>
    %c0_4 = arith.constant 0 : index
    %c0_5 = arith.constant 0 : index
    %8 = vector.load %arg4[%c0_4, %c0_5] : memref<2x128xf32, #tpu.memory_space<vmem>>, vector<2x128xf32>
    %cst_6 = arith.constant dense<0.000000e+00> : vector<2x128xf32>
    %9 = tpu.matmul %8, %7, %cst_6 {dimension_numbers = #tpu.dot_dimension_numbers<[1], [0], [0], [1], [0, 0, 1, 1], [], []>, precision = #tpu.contract_precision<fp32>} : vector<2x128xf32>, vector<128x128xf32>, vector<2x128xf32> -> vector<2x128xf32>
    %c0_7 = arith.constant 0 : index
    %c0_8 = arith.constant 0 : index
    %10 = vector.load %arg2[%c0_7, %c0_8] : memref<3x128xf32, #tpu.memory_space<vmem>>, vector<3x128xf32>
    %11 = vector.extract_strided_slice %10 {offsets = [0, 0], sizes = [2, 128], strides = [1, 1]} : vector<3x128xf32> to vector<2x128xf32>
    %12 = vector.extract_strided_slice %10 {offsets = [2, 0], sizes = [1, 128], strides = [1, 1]} : vector<3x128xf32> to vector<1x128xf32>
    %13 = arith.mulf %4, %11 : vector<2x128xf32>
    %cst_9 = arith.constant dense<0.000000e+00> : vector<128xf32>
    %14 = vector.multi_reduction <add>, %13, %cst_9 [0] : vector<2x128xf32> to vector<128xf32>
    %15 = vector.shape_cast %14 : vector<128xf32> to vector<1x128xf32>
    %16 = vector.extract_strided_slice %9 {offsets = [0, 0], sizes = [1, 128], strides = [1, 1]} : vector<2x128xf32> to vector<1x128xf32>
    %17 = vector.extract_strided_slice %9 {offsets = [1, 0], sizes = [1, 128], strides = [1, 1]} : vector<2x128xf32> to vector<1x128xf32>
    %cst_10 = arith.constant 0.000000e+00 : f32
    %18 = vector.broadcast %cst_10 : f32 to vector<1x128xf32>
    %19 = arith.maximumf %17, %18 : vector<1x128xf32>
    %20 = vector.broadcast %cst_10 : f32 to vector<1x128xf32>
    %21 = arith.subf %17, %20 : vector<1x128xf32>
    %22 = arith.cmpf one, %21, %21 : vector<1x128xf32>
    %23 = vector.broadcast %cst_10 : f32 to vector<1x128xf32>
    %24 = arith.addf %17, %23 : vector<1x128xf32>
    %25 = math.absf %21 : vector<1x128xf32>
    %cst_11 = arith.constant 0.000000e+00 : f32
    %26 = vector.broadcast %cst_11 : f32 to vector<1x128xf32>
    %27 = arith.subf %26, %25 : vector<1x128xf32>
    %28 = math.exp %27 : vector<1x128xf32>
    %29 = math.log1p %28 : vector<1x128xf32>
    %30 = arith.addf %19, %29 : vector<1x128xf32>
    %31 = arith.select %22, %24, %30 : vector<1x128xi1>, vector<1x128xf32>
    %32 = arith.addf %15, %16 : vector<1x128xf32>
    %33 = arith.mulf %31, %12 : vector<1x128xf32>
    %34 = arith.addf %32, %33 : vector<1x128xf32>
    %c0_12 = arith.constant 0 : index
    %c0_13 = arith.constant 0 : index
    %35 = vector.load %arg5[%c0_12, %c0_13] : memref<1x128xf32, #tpu.memory_space<vmem>>, vector<1x128xf32>
    tpu.vector_store %arg5[%c0_12, %c0_13], %34 {strides = array<i32>} : memref<1x128xf32, #tpu.memory_space<vmem>>, vector<1x128xf32>,
    return
  }
  func.func @transform_0(%arg0: i32) -> (i32, i32) {
    %c0_i32 = arith.constant 0 : i32
    %c0_i32_0 = arith.constant 0 : i32
    return %c0_i32, %arg0 : i32, i32
  }
  func.func @transform_1(%arg0: i32) -> (i32, i32) {
    %c0_i32 = arith.constant 0 : i32
    %c0_i32_0 = arith.constant 0 : i32
    return %c0_i32, %arg0 : i32, i32
  }
  func.func @transform_2(%arg0: i32) -> (i32, i32) {
    %c0_i32 = arith.constant 0 : i32
    %c0_i32_0 = arith.constant 0 : i32
    %c0_i32_1 = arith.constant 0 : i32
    return %c0_i32, %c0_i32_0 : i32, i32
  }
  func.func @transform_3(%arg0: i32) -> (i32, i32) {
    %c0_i32 = arith.constant 0 : i32
    %c0_i32_0 = arith.constant 0 : i32
    %c0_i32_1 = arith.constant 0 : i32
    return %c0_i32, %c0_i32_0 : i32, i32
  }
  func.func @transform_4(%arg0: i32) -> (i32, i32) {
    %c0_i32 = arith.constant 0 : i32
    %c0_i32_0 = arith.constant 0 : i32
    return %c0_i32, %arg0 : i32, i32
  }
}

</mosaic_0001>

<bundles_post_ra>
// kernel: tpu_custom_call.1
= control target key start
LH: loop header
LB: loop body
LE: loop exit
PB: predicated region body
PF: predicated region fallthrough
CT: control target
= control target key end

     0   :  { %9 = vsyncpa [#allocation3], 0  ;;  %s4663_s0 = inlined_call_operand.hbm [shape: f32[128,128], index: 0, kind: input, shape index: {}]   ;;  %s4664_s1 = inlined_call_operand.hbm [shape: f32[3,128], index: 1, kind: input, shape index: {}]   ;;  %s4665_s2 = inlined_call_operand.hbm [shape: f32[144,128], index: 2, kind: input, shape index: {}]   ;;  %s4666_s3 = inlined_call_operand.vmem [shape: f32[2,128], index: 3, kind: input, shape index: {}]   ;;  %s4667_s4 = inlined_call_operand.hbm [shape: f32[1,128], index: 4, kind: output, shape index: {}]  }
   0x1   :  { %10 = vsyncpa [#allocation6], 0 }
   0x2   :  { %11 = vsyncpa [#allocation4], 0  ;;  %s3613_s15 = smov [#allocation5]   ;;  %s3614_s17 = smov [#allocation2]  }
   0x3   :  { %s30_s16 = sshll.u32 %s3613_s15, 4  ;;  %s17_s18 = sshll.u32 %s3614_s17, 4  ;;  %s31_s16 = int_to_ptr.vmem [resolvable:$true] %s30_s16  ;;  %s3647_s18 = int_to_ptr.vmem [resolvable:$true] %s17_s18 }
   0x4   :  { %s3519_s21 = scalar_lea.hbm %s4664_s1, 64 }
   0x5   :  { %p3520_p0 = scmp.ne.s32.totalorder %s4664_s1, %s3519_s21  ;;  %p3523_p1 = scmp.lt.u32.totalorder %s3519_s21, %s4664_s1 }
   0x7   :  { %p3525_p2 = pnand %p3523_p1, %p3520_p0 }
   0x9   :  { %3528 = shalt.err (!%p3525_p2)
}
   0xa   :  { %s3529_s26 = scalar_lea.vmem %s31_s16, 64  ;;  %p3534_p4 = scmp.lt.s32.totalorder %s31_s16, %s31_s16 }
   0xb   :  { %p3530_p3 = scmp.ne.s32.totalorder %s31_s16, %s3529_s26  ;;  %p3535_p5 = scmp.lt.s32.totalorder %s3529_s26, %s3529_s26 }
   0xd   :  { %p3536_p6 = por %p3535_p5, %p3534_p4 }
   0xf   :  { %p3537_p7 = pnand %p3536_p6, %p3530_p3 }
  0x11   :  { %3540 = shalt.err (!%p3537_p7)
}
  0x12   :  { %33 = dma.hbm_to_vmem [thread:$0]  %s4664_s1, 64, %s31_s16, [#allocation6]  }
  0x13   :  { %s3541_s5 = scalar_lea.hbm %s4663_s0, 2048 }
  0x14   :  { %p3542_p8 = scmp.ne.s32.totalorder %s4663_s0, %s3541_s5  ;;  %p3545_p9 = scmp.lt.u32.totalorder %s3541_s5, %s4663_s0 }
  0x16   :  { %p3547_p10 = pnand %p3545_p9, %p3542_p8 }
  0x18   :  { %3550 = shalt.err (!%p3547_p10)
}
  0x19   :  { %s3551_s10 = scalar_lea.vmem %s3647_s18, 2048  ;;  %p3556_p12 = scmp.lt.s32.totalorder %s3647_s18, %s3647_s18 }
  0x1a   :  { %p3552_p11 = scmp.ne.s32.totalorder %s3647_s18, %s3551_s10  ;;  %p3557_p13 = scmp.lt.s32.totalorder %s3551_s10, %s3551_s10 }
  0x1c   :  { %p3558_p0 = por %p3557_p13, %p3556_p12 }
  0x1e   :  { %p3559_p1 = pnand %p3558_p0, %p3552_p11 }
  0x20   :  { %3562 = shalt.err (!%p3559_p1)
}
  0x21   :  { %s3615_s1 = smov 128   ;;  %s3616_s11 = smov 8  }
  0x22   :  { %23 = dma.hbm_to_vmem [thread:$0]  %s4663_s0, 2048, %s3647_s18, [#allocation3], %s3615_s1, %s3615_s1, %s3616_s11  }
  0x23   :  { %s3617_s14 = smov [#allocation7]   ;;  %s3563_s19 = scalar_lea.hbm %s4665_s2, 2304 }
  0x24   :  { %s39_s15 = sshll.u32 %s3617_s14, 4  ;;  %p3564_p2 = scmp.ne.s32.totalorder %s4665_s2, %s3563_s19  ;;  %s40_s15 = int_to_ptr.vmem [resolvable:$true] %s39_s15 }
  0x25   :  { %p3567_p3 = scmp.lt.u32.totalorder %s3563_s19, %s4665_s2 }
  0x27   :  { %p3569_p4 = pnand %p3567_p3, %p3564_p2 }
  0x29   :  { %3572 = shalt.err (!%p3569_p4)
}
  0x2a   :  { %s3573_s24 = scalar_lea.vmem %s40_s15, 2304  ;;  %p3578_p6 = scmp.lt.s32.totalorder %s40_s15, %s40_s15 }
  0x2b   :  { %p3574_p5 = scmp.ne.s32.totalorder %s40_s15, %s3573_s24  ;;  %p3579_p7 = scmp.lt.s32.totalorder %s3573_s24, %s3573_s24 }
  0x2d   :  { %p3580_p8 = por %p3579_p7, %p3578_p6 }
  0x2f   :  { %p3581_p9 = pnand %p3580_p8, %p3574_p5 }
  0x31   :  { %3584 = shalt.err (!%p3581_p9)
}
  0x32   :  { %45 = dma.hbm_to_vmem [thread:$0]  %s4665_s2, 2304, %s40_s15, [#allocation6], %s3615_s1, %s3615_s1, %s3616_s11  }
  0x33   :  { %3607 = dma.done.wait [#allocation3], 2048  }
  0x34   :  { %3608 = vsyncadd [#allocation3], 4294965248 }
  0x35   :  { %3609 = dma.done.wait [#allocation6], 2368  }
  0x36   :  { %3610 = vsyncadd [#allocation6], 4294964928  ;;  %v57_v0 = vld [vmem:[#allocation2] sm:$0xff]  ;;  %v58_v1 = vld [vmem:[#allocation2 + $0x8] sm:$0xff]  ;;  %vm3619_vm0 = vmmov 0   ;;  %vm2133_vm1 = vcmask 1041408  }
  0x37   :  { %v59_v2 = vld [vmem:[#allocation2 + $0x10] sm:$0xff]  ;;  %v92_v3 = vand.u32 4294901760, %v57_v0  ;;  %v95_v4 = vand.u32 4294901760, %v58_v1  ;;  %v60_v5 = vld [vmem:[#allocation2 + $0x18] sm:$0xff]  ;;  %v3690_v7 = vld [vmem:[#allocation2 + $0x20] sm:$0xff] }
  0x38   :  { %v98_v6 = vand.u32 4294901760, %v59_v2  ;;  %v3692_v8 = vld [vmem:[#allocation2 + $0x28] sm:$0xff]  ;;  %v101_v9 = vand.u32 4294901760, %v60_v5  ;;  %v104_v11 = vand.u32 4294901760, %v3690_v7  ;;  %v3700_v14 = vld [vmem:[#allocation2 + $0x30] sm:$0xff]  ;;  %v3702_v15 = vld [vmem:[#allocation2 + $0x38] sm:$0xff] }
  0x39   :  { %v3694_v10 = vpack.c.bf16 %v95_v4, %v92_v3  ;;  %v107_v12 = vand.u32 4294901760, %v3692_v8  ;;  %v73_v16 = vld [vmem:[#allocation7] sm:$0xff]  ;;  %v74_v18 = vld [vmem:[#allocation7 + $0x8] sm:$0xff]  ;;  %v110_v20 = vand.u32 4294901760, %v3700_v14  ;;  %v113_v21 = vand.u32 4294901760, %v3702_v15  ;;  %v75_v22 = vld [vmem:[#allocation7 + $0x10] sm:$0xff] }
  0x3a   :  { %v3698_v13 = vpack.c.bf16 %v101_v9, %v98_v6  ;;  %v3707_v17 = vand.u32 4294901760, %v73_v16  ;;  %v3720_v23 = vld [vmem:[#allocation2 + $0x40] sm:$0xff]  ;;  %v3722_v24 = vld [vmem:[#allocation2 + $0x48] sm:$0xff]  ;;  %v3727_v26 = vand.u32 4294901760, %v74_v18  ;;  %v3730_v27 = vld [vmem:[#allocation2 + $0x50] sm:$0xff]  ;;  %v3733_v29 = vsub.f32 %v57_v0, %v92_v3 }
  0x3b   :  { %4735 = vst [vmem:[#allocation12_spill] sm:$0xff] %v3694_v10  ;;  %3056 = vmatprep.subr.bf16.mxu0 %v3694_v10  ;;  %3391 = vmatprep.subr.bf16.mxu1 %v3694_v10  ;;  %v3715_v19 = vpack.c.bf16 %v107_v12, %v104_v11  ;;  %v3735_v30 = vsub.f32 %v58_v1, %v95_v4  ;;  %v3737_v31 = vand.u32 4294901760, %v75_v22  ;;  %v76_v32 = vld [vmem:[#allocation7 + $0x18] sm:$0xff]  ;;  %v116_v34 = vand.u32 4294901760, %v3720_v23  ;;  %v77_v38 = vld [vmem:[#allocation7 + $0x20] sm:$0xff]  ;;  %v78_v53 = vld [vmem:[#allocation7 + $0x28] sm:$0xff] }
  0x3c   :  { %4736 = vst [vmem:[#allocation13_spill] sm:$0xff] %v3698_v13  ;;  %3058 = vmatpush3.bf16.msra.mxu0 %v3694_v10  ;;  %3399 = vmatpush3.bf16.msra.mxu1 %v3694_v10  ;;  %v3725_v25 = vsub.f32 %v73_v16, %v3707_v17  ;;  %v3745_v33 = vpack.c.bf16 %v113_v21, %v110_v20  ;;  %v119_v35 = vand.u32 4294901760, %v3722_v24  ;;  %v3750_v36 = vld [vmem:[#allocation2 + $0x58] sm:$0xff]  ;;  %v4682_v39 = vand.u32 4294901760, %v3730_v27  ;;  %v3757_v40 = vld [vmem:[#allocation2 + $0x60] sm:$0xff]  ;;  %v3766_v44 = vld [vmem:[#allocation2 + $0x68] sm:$0xff] }
  0x3d   :  { %3060 = vmatprep.subr.bf16.mxu0 %v3698_v13  ;;  %4737 = vst [vmem:[#allocation14_spill] sm:$0xff] %v3715_v19  ;;  %3392 = vmatprep.subr.bf16.mxu1 %v3698_v13  ;;  %v3759_v41 = vand.u32 4294901760, %v76_v32  ;;  %v3761_v42 = vsub.f32 %v59_v2, %v98_v6  ;;  %v3763_v43 = vsub.f32 %v60_v5, %v101_v9  ;;  %v4674_v47 = vand.u32 4294901760, %v3733_v29  ;;  %v3790_v56 = vld [vmem:[#allocation2 + $0x70] sm:$0xff]  ;;  %v3792_v57 = vld [vmem:[#allocation2 + $0x78] sm:$0xff] }
  0x3e   :  { %4738 = vst [vmem:[#allocation15_spill] sm:$0xff] %v3725_v25  ;;  %v4668_v28 = vand.u32 4294901760, %v3725_v25  ;;  %4739 = vst [vmem:[#allocation16_spill] sm:$0xff] %v3745_v33  ;;  %2821 = vmatprep.mubr.f32.mxu1 %v3737_v31  ;;  %v3769_v46 = vsub.f32 %v74_v18, %v3727_v26  ;;  %v4673_v48 = vand.u32 4294901760, %v3735_v30  ;;  %v3779_v49 = vpack.c.bf16 %v119_v35, %v116_v34  ;;  %v79_v16 = vld [vmem:[#allocation7 + $0x30] sm:$0xff]  ;;  %v80_v18 = vld [vmem:[#allocation7 + $0x38] sm:$0xff] }
  0x3f   :  { %v4677_v50 = vand.u32 4294901760, %v3750_v36  ;;  %v3783_v51 = vsub.f32 %v75_v22, %v3737_v31  ;;  %v3785_v52 = vand.u32 4294901760, %v77_v38  ;;  %v4676_v54 = vand.u32 4294901760, %v3757_v40 }
  0x40   :  { %3062 = vmatpush3.bf16.msra.mxu0 %v3698_v13  ;;  %3400 = vmatpush3.bf16.msra.mxu1 %v3698_v13  ;;  %v175_v37 = vsub.f32 %v3725_v25, %v4668_v28  ;;  %4740 = vst [vmem:[#allocation17_spill] sm:$0xff] %v3769_v46  ;;  %4741 = vst [vmem:[#allocation18_spill] sm:$0xff] %v3779_v49  ;;  %v4675_v55 = vand.u32 4294901760, %v3766_v44  ;;  %v3795_v58 = vsub.f32 %v76_v32, %v3759_v41 }
  0x41   :  { %3064 = vmatprep.subr.bf16.mxu0 %v3715_v19  ;;  %3393 = vmatprep.subr.bf16.mxu1 %v3715_v19  ;;  %4742 = vst [vmem:[#allocation19_spill] sm:$0xff] %v3783_v51  ;;  %v4671_v59 = vand.u32 4294901760, %v3761_v42  ;;  %v4669_v60 = vand.u32 4294901760, %v3763_v43  ;;  %v4670_v61 = vand.u32 4294901760, %v3769_v46  ;;  %v355_v62 = vsub.f32 %v3733_v29, %v4674_v47 }
  0x42   :  { %v176_v45 = vand.u32 4294901760, %v175_v37  ;;  %4743 = vst [vmem:[#allocation20_spill] sm:$0xff] %v3795_v58  ;;  %v362_v63 = vsub.f32 %v3735_v30, %v4673_v48  ;;  %v3807_v0 = vand.u32 4294901760, %v78_v53  ;;  %v3815_v1 = vpack.c.bf16 %v4677_v50, %v4682_v39  ;;  %v82_v50 = vld [vmem:[#allocation7 + $0x48] sm:$0xff] }
  0x43   :  { %v4672_v2 = vand.u32 4294901760, %v3783_v51  ;;  %v3819_v3 = vsub.f32 %v77_v38, %v3785_v52  ;;  %v4681_v4 = vand.u32 4294901760, %v3790_v56  ;;  %v4680_v5 = vand.u32 4294901760, %v3792_v57 }
  0x44   :  { %3066 = vmatpush3.bf16.msra.mxu0 %v3715_v19  ;;  %3401 = vmatpush3.bf16.msra.mxu1 %v3715_v19  ;;  %4744 = vst [vmem:[#allocation21_spill] sm:$0xff] %v3815_v1  ;;  %v3827_v6 = vsub.f32 %v3690_v7, %v104_v11  ;;  %v3832_v9 = vsub.f32 %v3692_v8, %v107_v12  ;;  %v4678_v32 = vand.u32 4294901760, %v3795_v58  ;;  %v356_v12 = vand.u32 4294901760, %v355_v62  ;;  %v81_v62 = vld [vmem:[#allocation7 + $0x40] sm:$0xff] }
  0x45   :  { %3068 = vmatprep.subr.bf16.mxu0 %v3745_v33  ;;  %3394 = vmatprep.subr.bf16.mxu1 %v3745_v33  ;;  %4745 = vst [vmem:[#allocation22_spill] sm:$0xff] %v3819_v3  ;;  %v3838_v22 = vpack.c.bf16 %v4675_v55, %v4676_v54  ;;  %v369_v7 = vsub.f32 %v3761_v42, %v4671_v59  ;;  %v363_v37 = vand.u32 4294901760, %v362_v63  ;;  %v4679_v28 = vand.u32 4294901760, %v3819_v3 }
  0x46   :  { %2523 = vmatprep.mubr.f32.mxu0 %v176_v45  ;;  %v376_v11 = vsub.f32 %v3763_v43, %v4669_v60  ;;  %v3851_v8 = vsub.f32 %v3769_v46, %v4670_v61  ;;  %v3854_v38 = vsub.f32 %v78_v53, %v3807_v0  ;;  %v3861_v45 = vsub.f32 %v3783_v51, %v4672_v2 }
  0x47   :  { %4746 = vst [vmem:[#allocation23_spill] sm:$0xff] %v3838_v22  ;;  %v3864_v60 = vand.u32 4294901760, %v79_v16  ;;  %v3866_v61 = vand.u32 4294901760, %v80_v18  ;;  %v4684_v53 = vand.u32 4294901760, %v3827_v6  ;;  %v4683_v63 = vand.u32 4294901760, %v3832_v9 }
  0x48   :  { %3070 = vmatpush3.bf16.msra.mxu0 %v3745_v33  ;;  %3402 = vmatpush3.bf16.msra.mxu1 %v3745_v33  ;;  %4747 = vst [vmem:[#allocation24_spill] sm:$0xff] %v3854_v38  ;;  %v3874_v59 = vsub.f32 %v3700_v14, %v110_v20  ;;  %v3879_v2 = vsub.f32 %v3702_v15, %v113_v21  ;;  %v370_v55 = vand.u32 4294901760, %v369_v7  ;;  %v377_v54 = vand.u32 4294901760, %v376_v11 }
  0x49   :  { %3072 = vmatprep.subr.bf16.mxu0 %v3779_v49  ;;  %3395 = vmatprep.subr.bf16.mxu1 %v3779_v49  ;;  %v3885_v48 = vpack.c.bf16 %v4680_v5, %v4681_v4  ;;  %v3890_v47 = vsub.f32 %v3795_v58, %v4678_v32  ;;  %v186_v14 = vand.u32 4294901760, %v3851_v8  ;;  %v3894_v20 = vpack.c.bf16 %v363_v37, %v356_v12  ;;  %v83_v12 = vld [vmem:[#allocation7 + $0x50] sm:$0xff] }
  0x4a   :  { %v4685_v15 = vand.u32 4294901760, %v3854_v38  ;;  %v3897_v21 = vand.u32 4294901760, %v81_v62  ;;  %v196_v32 = vand.u32 4294901760, %v3861_v45  ;;  %v3905_v7 = vsub.f32 %v3819_v3, %v4679_v28  ;;  %v87_v58 = vld [vmem:[#allocation7 + $0x70] sm:$0xff] }
  0x4b   :  { %4748 = vst [vmem:[#allocation25_spill] sm:$0xff] %v3885_v48  ;;  %v3908_v11 = vsub.f32 %v79_v16, %v3864_v60  ;;  %v3911_v8 = vsub.f32 %v80_v18, %v3866_v61  ;;  %v383_v37 = vsub.f32 %v3827_v6, %v4684_v53  ;;  %v390_v45 = vsub.f32 %v3832_v9, %v4683_v63  ;;  %v84_v16 = vld [vmem:[#allocation7 + $0x58] sm:$0xff] }
  0x4c   :  { %3074 = vmatpush3.bf16.msra.mxu0 %v3779_v49  ;;  %3403 = vmatpush3.bf16.msra.mxu1 %v3779_v49  ;;  %v3923_v4 = vpack.c.bf16 %v377_v54, %v370_v55  ;;  %v3925_v18 = vand.u32 4294901760, %v82_v50  ;;  %v3930_v39 = vsub.f32 %v3720_v23, %v116_v34  ;;  %v3936_v63 = vsub.f32 %v3854_v38, %v4685_v15  ;;  %v85_v23 = vld [vmem:[#allocation7 + $0x60] sm:$0xff] }
  0x4d   :  { %3076 = vmatprep.subr.bf16.mxu0 %v3815_v1  ;;  %3396 = vmatprep.subr.bf16.mxu1 %v3815_v1  ;;  %4749 = vst [vmem:[#allocation26_spill] sm:$0xff] %v3908_v11  ;;  %4750 = vst [vmem:[#allocation27_spill] sm:$0xff] %v3911_v8  ;;  %v3939_v53 = vsub.f32 %v81_v62, %v3897_v21  ;;  %v3944_v54 = vsub.f32 %v3722_v24, %v119_v35  ;;  %v3946_v55 = vand.u32 4294901760, %v83_v12 }
  0x4e   :  { %v216_v34 = vand.u32 4294901760, %v3905_v7  ;;  %v4752_v62 = vand.u32 4294901760, %v3730_v27  ;;  %v384_v24 = vand.u32 4294901760, %v383_v37  ;;  %v391_v35 = vand.u32 4294901760, %v390_v45 }
  0x4f   :  { %4751 = vst [vmem:[#allocation28_spill] sm:$0xff] %v3939_v53  ;;  %v4754_v33 = vand.u32 4294901760, %v3879_v2  ;;  %v3966_v15 = vsub.f32 %v82_v50, %v3925_v18  ;;  %v3971_v5 = vand.u32 4294901760, %v85_v23  ;;  %v3977_v45 = vsub.f32 %v83_v12, %v3946_v55 }
  0x50   :  { %3078 = vmatpush3.bf16.msra.mxu0 %v3815_v1  ;;  %3404 = vmatpush3.bf16.msra.mxu1 %v3815_v1  ;;  %v3955_v28 = vsub.f32 %v3730_v27, %v4752_v62  ;;  %v4753_v1 = vand.u32 4294901760, %v3874_v59  ;;  %v3969_v62 = vand.u32 4294901760, %v84_v16  ;;  %v226_v27 = vand.u32 4294901760, %v3936_v63  ;;  %v86_v63 = vld [vmem:[#allocation7 + $0x68] sm:$0xff] }
  0x51   :  { %3080 = vmatprep.subr.bf16.mxu0 %v3838_v22  ;;  %3397 = vmatprep.subr.bf16.mxu1 %v3838_v22  ;;  %v404_v7 = vsub.f32 %v3879_v2, %v4754_v33  ;;  %4755 = vst [vmem:[#allocation29_spill] sm:$0xff] %v3966_v15  ;;  %4756 = vst [vmem:[#allocation30_spill] sm:$0xff] %v3977_v45  ;;  %v4757_v33 = vand.u32 4294901760, %v3750_v36  ;;  %v4759_v37 = vand.u32 4294901760, %v3911_v8  ;;  %v4775_v46 = vand.u32 4294901760, %v3792_v57 }
  0x52   :  { %v397_v49 = vsub.f32 %v3874_v59, %v4753_v1  ;;  %v4007_v12 = vsub.f32 %v85_v23, %v3971_v5  ;;  %v4028_v23 = vand.u32 4294901760, %v86_v63 }
  0x53   :  { %v3982_v50 = vsub.f32 %v3750_v36, %v4757_v33  ;;  %v3994_v1 = vsub.f32 %v3911_v8, %v4759_v37  ;;  %v3095_v36 = vpack.c.bf16 %v391_v35, %v384_v24  ;;  %v405_v19 = vand.u32 4294901760, %v404_v7 }
  0x54   :  { %3082 = vmatpush3.bf16.msra.mxu0 %v3838_v22  ;;  %3405 = vmatpush3.bf16.msra.mxu1 %v3838_v22  ;;  %v4758_v22 = vand.u32 4294901760, %v3908_v11  ;;  %v398_v33 = vand.u32 4294901760, %v397_v49  ;;  %v4004_v37 = vsub.f32 %v84_v16, %v3969_v62  ;;  %4762 = vst [vmem:[#allocation32_spill] sm:$0xff] %v4007_v12  ;;  %v4763_v49 = vand.u32 4294901760, %v3939_v53 }
  0x55   :  { %3084 = vmatprep.subr.bf16.mxu0 %v3885_v48  ;;  %3398 = vmatprep.subr.bf16.mxu1 %v3885_v48  ;;  %v4710_v3 = vand.u32 4294901760, %v3982_v50  ;;  %v4765_v16 = vand.u32 4294901760, %v3757_v40  ;;  %v4087_v25 = vsub.f32 %v3792_v57, %v4775_v46  ;;  %v4783_v57 = vand.u32 4294901760, %v3832_v9 }
  0x56   :  { %v3989_v38 = vsub.f32 %v3908_v11, %v4758_v22  ;;  %v4760_v11 = vand.u32 4294901760, %v3930_v39  ;;  %4761 = vst [vmem:[#allocation31_spill] sm:$0xff] %v4004_v37  ;;  %v4013_v24 = vsub.f32 %v3939_v53, %v4763_v49  ;;  %v4030_v49 = vand.u32 4294901760, %v87_v58 }
  0x57   :  { %v4022_v7 = vsub.f32 %v3757_v40, %v4765_v16  ;;  %v4767_v22 = vand.u32 4294901760, %v3766_v44  ;;  %v246_v16 = vand.u32 4294901760, %v3994_v1  ;;  %v4769_v53 = vand.u32 4294901760, %v3966_v15 }
  0x58   :  { %3086 = vmatpush3.bf16.msra.mxu0 %v3885_v48  ;;  %3406 = vmatpush3.bf16.msra.mxu1 %v3885_v48  ;;  %v411_v13 = vsub.f32 %v3930_v39, %v4760_v11  ;;  %v236_v40 = vand.u32 4294901760, %v3989_v38  ;;  %v3099_v11 = vpack.c.bf16 %v405_v19, %v398_v33  ;;  %v4768_v48 = vand.u32 4294901760, %v3890_v47  ;;  %v88_v19 = vld [vmem:[#allocation7 + $0x78] sm:$0xff]  ;;  %v89_v33 = vld [vmem:[#allocation7 + $0x80] sm:$0xff] }
  0x59   :  { %3088 = vmatprep.subr.bf16.mxu0 %v3894_v20  ;;  %v4770_v47 = vand.u32 4294901760, %v3977_v45  ;;  %v4060_v38 = vsub.f32 %v86_v63, %v4028_v23  ;;  %v4063_v1 = vsub.f32 %v87_v58, %v4030_v49  ;;  %v4773_v63 = vand.u32 4294901760, %v4004_v37 }
  0x5b   :  { %2524 = vmatmul.mubr.f32.vlgmr.msra.gmra.mrb[0].mxu0 %v186_v14  ;;  %v4764_v14 = vand.u32 4294901760, %v3944_v54  ;;  %2822 = vmatmul.mubr.f32.vlgmr.msra.gmra.mrb[0].mxu1 %v3759_v41 }
  0x5c   :  { %3090 = vmatpush3.bf16.msra.mxu0 %v3894_v20  ;;  %2526 = vmatprep.mubr.f32.mxu0 %v196_v32  ;;  %v4766_v32 = vand.u32 4294901760, %v3955_v28 }
  0x5d   :  { %v418_v35 = vsub.f32 %v3944_v54, %v4764_v14  ;;  %3092 = vmatprep.subr.bf16.mxu0 %v3923_v4  ;;  %v4035_v14 = vsub.f32 %v3766_v44, %v4767_v22  ;;  %2824 = vmatprep.mubr.f32.mxu1 %v3785_v52  ;;  %v4049_v44 = vsub.f32 %v3966_v15, %v4769_v53  ;;  %v412_v22 = vand.u32 4294901760, %v411_v13 }
  0x5e   :  { %v425_v20 = vsub.f32 %v3955_v28, %v4766_v32  ;;  %v432_v32 = vsub.f32 %v3982_v50, %v4710_v3  ;;  %v256_v3 = vand.u32 4294901760, %v4013_v24  ;;  %v438_v53 = vand.u32 4294901760, %v4022_v7 }
  0x5f   :  { %2527 = vmatmul.mubr.f32.gmra.mrb[2].mxu0 %v4768_v48  ;;  %v419_v8 = vand.u32 4294901760, %v418_v35  ;;  %v275_v48 = vsub.f32 %v3977_v45, %v4770_v47  ;;  %2825 = vmatmul.mubr.f32.gmra.mrb[2].mxu1 %v3807_v0  ;;  %v4067_v24 = vand.u32 4294901760, %v88_v19  ;;  %v4069_v35 = vand.u32 4294901760, %v89_v33  ;;  %v90_v47 = vld [vmem:[#allocation7 + $0x88] sm:$0xff] }
  0x60   :  { %3094 = vmatpush3.bf16.msra.mxu0 %v3923_v4  ;;  %2529 = vmatprep.mubr.f32.mxu0 %v216_v34  ;;  %v426_v13 = vand.u32 4294901760, %v425_v20  ;;  %v445_v4 = vand.u32 4294901760, %v4035_v14  ;;  %v433_v34 = vand.u32 4294901760, %v432_v32  ;;  %v4771_v45 = vand.u32 4294901760, %v3790_v56 }
  0x61   :  { %3096 = vmatprep.subr.bf16.mxu0 %v3095_v36  ;;  %2827 = vmatprep.mubr.f32.mxu1 %v3864_v60  ;;  %v266_v58 = vand.u32 4294901760, %v4049_v44  ;;  %v285_v15 = vsub.f32 %v4004_v37, %v4773_v63  ;;  %v4774_v32 = vand.u32 4294901760, %v4007_v12  ;;  %v4093_v10 = vand.u32 4294901760, %v90_v47 }
  0x62   :  { %v4074_v20 = vsub.f32 %v3790_v56, %v4771_v45  ;;  %v3103_v56 = vpack.c.bf16 %v419_v8, %v412_v22  ;;  %v276_v45 = vand.u32 4294901760, %v275_v48  ;;  %v446_v37 = vsub.f32 %v4035_v14, %v445_v4 }
  0x63   :  { %2530 = vmatmul.mubr.f32.gmra.mrb[4].mxu0 %v226_v27  ;;  %v295_v51 = vsub.f32 %v4007_v12, %v4774_v32  ;;  %v439_v27 = vsub.f32 %v4022_v7, %v438_v53  ;;  %v459_v32 = vand.u32 4294901760, %v4087_v25  ;;  %2828 = vmatmul.mubr.f32.gmra.mrb[4].mxu1 %v3866_v61  ;;  %v3107_v46 = vpack.c.bf16 %v433_v34, %v426_v13 }
  0x64   :  { %4772 = vst [vmem:[#allocation33_spill] sm:$0xff] %v4074_v20  ;;  %3098 = vmatpush3.bf16.msra.mxu0 %v3095_v36  ;;  %2532 = vmatprep.mubr.f32.mxu0 %v236_v40  ;;  %v452_v44 = vand.u32 4294901760, %v4074_v20  ;;  %v4099_v8 = vsub.f32 %v88_v19, %v4067_v24  ;;  %v4102_v36 = vsub.f32 %v89_v33, %v4069_v35  ;;  %v4776_v22 = vand.u32 4294901760, %v3733_v29 }
  0x65   :  { %3100 = vmatprep.subr.bf16.mxu0 %v3099_v11  ;;  %2830 = vmatprep.mubr.f32.mxu1 %v3897_v21  ;;  %v4777_v48 = vand.u32 4294901760, %v3735_v30  ;;  %v4779_v13 = vand.u32 4294901760, %v3761_v42  ;;  %v4780_v34 = vand.u32 4294901760, %v3763_v43  ;;  %v4782_v33 = vand.u32 4294901760, %v3827_v6 }
  0x66   :  { %v453_v40 = vsub.f32 %v4074_v20, %v452_v44  ;;  %v4784_v20 = vand.u32 4294901760, %v3874_v59 }
  0x67   :  { %2533 = vmatmul.mubr.f32.gmra.mrb[6].mxu0 %v246_v16  ;;  %v4110_v63 = vpack.c.bf16 %v4777_v48, %v4776_v22  ;;  %v4116_v19 = vpack.c.bf16 %v4780_v34, %v4779_v13  ;;  %v4122_v12 = vpack.c.bf16 %v4783_v57, %v4782_v33  ;;  %v440_v16 = vand.u32 4294901760, %v439_v27  ;;  %2831 = vmatmul.mubr.f32.gmra.mrb[6].mxu1 %v3925_v18 }
  0x68   :  { %2535 = vmatprep.mubr.f32.mxu0 %v256_v3  ;;  %3102 = vmatpush3.bf16.msra.mxu0 %v3099_v11  ;;  %v4785_v22 = vand.u32 4294901760, %v3879_v2  ;;  %v4787_v13 = vand.u32 4294901760, %v3944_v54  ;;  %v4789_v57 = vand.u32 4294901760, %v3982_v50  ;;  %v447_v3 = vand.u32 4294901760, %v446_v37 }
  0x69   :  { %4778 = vst [vmem:[#allocation34_spill] sm:$0xff] %v4110_v63  ;;  %4781 = vst [vmem:[#allocation35_spill] sm:$0xff] %v4116_v19  ;;  %v4786_v63 = vand.u32 4294901760, %v3930_v39  ;;  %v4788_v19 = vand.u32 4294901760, %v3955_v28  ;;  %3104 = vmatprep.subr.bf16.mxu0 %v3103_v56  ;;  %v460_v11 = vsub.f32 %v4087_v25, %v459_v32  ;;  %v4143_v27 = vpack.c.bf16 %v445_v4, %v438_v53 }
  0x6a   :  { %v4128_v48 = vpack.c.bf16 %v4785_v22, %v4784_v20  ;;  %v4145_v20 = vpack.c.bf16 %v459_v32, %v452_v44  ;;  %2833 = vmatprep.mubr.f32.mxu1 %v3946_v55  ;;  %v4790_v22 = vand.u32 4294901760, %v4060_v38  ;;  %v4154_v37 = vsub.f32 %v90_v47, %v4093_v10 }
  0x6b   :  { %v4134_v34 = vpack.c.bf16 %v4787_v13, %v4786_v63  ;;  %v4140_v33 = vpack.c.bf16 %v4789_v57, %v4788_v19  ;;  %2536 = vmatmul.mubr.f32.gmra.mrb[8].mxu0 %v266_v58  ;;  %v286_v63 = vand.u32 4294901760, %v285_v15  ;;  %v324_v19 = vand.u32 4294901760, %v4099_v8  ;;  %2834 = vmatmul.mubr.f32.gmra.mrb[8].mxu1 %v3969_v62 }
  0x6c   :  { %v305_v13 = vsub.f32 %v4060_v38, %v4790_v22  ;;  %2538 = vmatprep.mubr.f32.mxu0 %v276_v45  ;;  %3106 = vmatpush3.bf16.msra.mxu0 %v3103_v56  ;;  %v296_v53 = vand.u32 4294901760, %v295_v51  ;;  %v4791_v4 = vand.u32 4294901760, %v4063_v1  ;;  %v334_v32 = vand.u32 4294901760, %v4102_v36 }
  0x6d   :  { %3108 = vmatprep.subr.bf16.mxu0 %v3107_v46  ;;  %v3111_v15 = vpack.c.bf16 %v447_v3, %v440_v16  ;;  %v454_v58 = vand.u32 4294901760, %v453_v40  ;;  %v461_v57 = vand.u32 4294901760, %v460_v11  ;;  %2836 = vmatprep.mubr.f32.mxu1 %v3971_v5  ;;  %v325_v51 = vsub.f32 %v4099_v8, %v324_v19 }
  0x6e   :  { %v315_v44 = vsub.f32 %v4063_v1, %v4791_v4  ;;  %v306_v47 = vand.u32 4294901760, %v305_v13  ;;  %v344_v56 = vand.u32 4294901760, %v4154_v37  ;;  %v335_v40 = vsub.f32 %v4102_v36, %v334_v32  ;;  %v4802_v4 = vld [vmem:[#allocation26_spill] sm:$0xff] }
  0x6f   :  { %2539 = vmatmul.mubr.f32.gmra.mrb[10].mxu0 %v286_v63  ;;  %v3115_v16 = vpack.c.bf16 %v461_v57, %v454_v58  ;;  %2837 = vmatmul.mubr.f32.gmra.mrb[10].mxu1 %v4028_v23  ;;  %v326_v3 = vand.u32 4294901760, %v325_v51  ;;  %v3119_v63 = vpack.c.bf16 %v3735_v30, %v3733_v29  ;;  %v3123_v13 = vpack.c.bf16 %v3763_v43, %v3761_v42  ;;  %v4805_v58 = vld [vmem:[#allocation28_spill] sm:$0xff]  ;;  %v4806_v57 = vld [vmem:[#allocation18_spill] sm:$0xff] }
  0x70   :  { %2541 = vmatprep.mubr.f32.mxu0 %v296_v53  ;;  %3110 = vmatpush3.bf16.msra.mxu0 %v3107_v46  ;;  %v316_v45 = vand.u32 4294901760, %v315_v44  ;;  %v345_v11 = vsub.f32 %v4154_v37, %v344_v56  ;;  %v336_v46 = vand.u32 4294901760, %v335_v40  ;;  %v3127_v29 = vpack.c.bf16 %v3832_v9, %v3827_v6  ;;  %v4794_v6 = vld [vmem:[#allocation15_spill] sm:$0xff]  ;;  %v4795_v9 = vld [vmem:[#allocation17_spill] sm:$0xff]  ;;  %v4801_v53 = vld [vmem:[#allocation24_spill] sm:$0xff] }
  0x71   :  { %3112 = vmatprep.subr.bf16.mxu0 %v3111_v15  ;;  %2839 = vmatprep.mubr.f32.mxu1 %v4030_v49  ;;  %v3131_v30 = vpack.c.bf16 %v3879_v2, %v3874_v59  ;;  %v3135_v42 = vpack.c.bf16 %v3944_v54, %v3930_v39  ;;  %v3139_v43 = vpack.c.bf16 %v3982_v50, %v3955_v28  ;;  %v4792_v39 = vld [vmem:[#allocation33_spill] sm:$0xff]  ;;  %v4793_v28 = vld [vmem:[#allocation12_spill] sm:$0xff]  ;;  %v4808_v51 = vld [vmem:[#allocation30_spill] sm:$0xff] }
  0x72   :  { %v346_v22 = vand.u32 4294901760, %v345_v11  ;;  %v3143_v59 = vpack.c.bf16 %v4035_v14, %v4022_v7  ;;  %v3147_v2 = vpack.c.bf16 %v4087_v25, %v4792_v39  ;;  %v4796_v25 = vld [vmem:[#allocation19_spill] sm:$0xff]  ;;  %v4797_v54 = vld [vmem:[#allocation13_spill] sm:$0xff]  ;;  %v4798_v50 = vld [vmem:[#allocation20_spill] sm:$0xff] }
  0x73   :  { %2542 = vmatmul.mubr.f32.gmra.mrb[12].mxu0 %v306_v47  ;;  %2840 = vmatmul.mubr.f32.gmra.mrb[12].mxu1 %v4067_v24  ;;  %v4799_v7 = vld [vmem:[#allocation22_spill] sm:$0xff]  ;;  %v4803_v44 = vld [vmem:[#allocation16_spill] sm:$0xff]  ;;  %v4807_v47 = vld [vmem:[#allocation29_spill] sm:$0xff] }
  0x74   :  { %2544 = vmatprep.mubr.f32.mxu0 %v316_v45  ;;  %3114 = vmatpush3.bf16.msra.mxu0 %v3111_v15  ;;  %v4800_v14 = vld [vmem:[#allocation14_spill] sm:$0xff]  ;;  %v4804_v15 = vld [vmem:[#allocation27_spill] sm:$0xff]  ;;  %v4809_v45 = vld [vmem:[#allocation21_spill] sm:$0xff] }
  0x75   :  { %3116 = vmatprep.subr.bf16.mxu0 %v3115_v16  ;;  %2842 = vmatprep.mubr.f32.mxu1 %v4069_v35  ;;  %v4810_v40 = vld [vmem:[#allocation31_spill] sm:$0xff]  ;;  %v4813_v11 = vld [vmem:[#allocation25_spill] sm:$0xff]  ;;  %v4823_v39 = vand.u32 4294901760, %v4804_v15 }
  0x77   :  { %2545 = vmatmul.mubr.f32.gmra.mrb[14].mxu0 %v326_v3  ;;  %2843 = vmatmul.mubr.f32.gmra.mrb[14].mxu1 %v4093_v10  ;;  %v4812_v3 = vld [vmem:[#allocation23_spill] sm:$0xff] }
  0x78   :  { %2547 = vmatprep.mubr.f32.mxu0 %v336_v46  ;;  %3118 = vmatpush3.bf16.msra.mxu0 %v3115_v16  ;;  %v4811_v16 = vld [vmem:[#allocation32_spill] sm:$0xff]  ;;  %v4814_v46 = vld [vmem:[#allocation34_spill] sm:$0xff] }
  0x79   :  { %3120 = vmatprep.subr.bf16.mxu0 %v3119_v63 }
  0x7b   :  { %2548 = vmatmul.mubr.f32.gmra.mrb[16].mxu0 %v346_v22  ;;  %v4816_v22 = vand.u32 4294901760, %v4795_v9 }
  0x7c   :  { %2582 = vmatprep.mubr.f32.mxu0 %v3707_v17 }
  0x7f   :  { %2583 = vmatmul.mubr.f32.vlgmr.msra.gmra.mrb[0].mxu0 %v3727_v26 }
  0x80   :  { %3122 = vmatpush3.bf16.msra.mxu0 %v3119_v63  ;;  %2585 = vmatprep.mubr.f32.mxu0 %v3737_v31  ;;  %v4815_v63 = vand.u32 4294901760, %v4794_v6 }
  0x81   :  { %3124 = vmatprep.subr.bf16.mxu0 %v3123_v13 }
  0x83   :  { %2586 = vmatmul.mubr.f32.gmra.mrb[2].mxu0 %v3759_v41 }
  0x84   :  { %3126 = vmatpush3.bf16.msra.mxu0 %v3123_v13  ;;  %2588 = vmatprep.mubr.f32.mxu0 %v3785_v52  ;;  %v4817_v13 = vand.u32 4294901760, %v4796_v25 }
  0x85   :  { %3128 = vmatprep.subr.bf16.mxu0 %v3127_v29 }
  0x87   :  { %2589 = vmatmul.mubr.f32.gmra.mrb[4].mxu0 %v3807_v0 }
  0x88   :  { %3130 = vmatpush3.bf16.msra.mxu0 %v3127_v29  ;;  %2591 = vmatprep.mubr.f32.mxu0 %v3864_v60  ;;  %v4818_v29 = vld [vmem:[#allocation35_spill] sm:$0xff] }
  0x89   :  { %3132 = vmatprep.subr.bf16.mxu0 %v3131_v30 }
  0x8b   :  { %2592 = vmatmul.mubr.f32.gmra.mrb[6].mxu0 %v3866_v61 }
  0x8c   :  { %2594 = vmatprep.mubr.f32.mxu0 %v3897_v21  ;;  %3134 = vmatpush3.bf16.msra.mxu0 %v3131_v30  ;;  %v4819_v30 = vand.u32 4294901760, %v4798_v50 }
  0x8d   :  { %3136 = vmatprep.subr.bf16.mxu0 %v3135_v42 }
  0x8f   :  { %2595 = vmatmul.mubr.f32.gmra.mrb[8].mxu0 %v3925_v18 }
  0x90   :  { %2597 = vmatprep.mubr.f32.mxu0 %v3946_v55  ;;  %3138 = vmatpush3.bf16.msra.mxu0 %v3135_v42  ;;  %v4820_v42 = vand.u32 4294901760, %v4799_v7 }
  0x91   :  { %3140 = vmatprep.subr.bf16.mxu0 %v3139_v43 }
  0x93   :  { %2598 = vmatmul.mubr.f32.gmra.mrb[10].mxu0 %v3969_v62 }
  0x94   :  { %2600 = vmatprep.mubr.f32.mxu0 %v3971_v5  ;;  %3142 = vmatpush3.bf16.msra.mxu0 %v3139_v43  ;;  %v4821_v43 = vand.u32 4294901760, %v4801_v53 }
  0x95   :  { %3144 = vmatprep.subr.bf16.mxu0 %v3143_v59 }
  0x97   :  { %2601 = vmatmul.mubr.f32.gmra.mrb[12].mxu0 %v4028_v23 }
  0x98   :  { %2603 = vmatprep.mubr.f32.mxu0 %v4030_v49  ;;  %3146 = vmatpush3.bf16.msra.mxu0 %v3143_v59  ;;  %v4822_v59 = vand.u32 4294901760, %v4802_v4 }
  0x99   :  { %3148 = vmatprep.subr.bf16.mxu0 %v3147_v2 }
  0x9b   :  { %2604 = vmatmul.mubr.f32.gmra.mrb[14].mxu0 %v4067_v24 }
  0x9c   :  { %2606 = vmatprep.mubr.f32.mxu0 %v4069_v35  ;;  %3150 = vmatpush3.bf16.msra.mxu0 %v3147_v2  ;;  %v4824_v2 = vand.u32 4294901760, %v4805_v58 }
  0x9d   :  { %3152 = vmatprep.subr.bf16.mxu0 %v4793_v28 }
  0x9f   :  { %2607 = vmatmul.mubr.f32.gmra.mrb[16].mxu0 %v4093_v10 }
  0xa0   :  { %2641 = vmatprep.mubr.f32.mxu0 %v4794_v6  ;;  %v4825_v6 = vand.u32 4294901760, %v4807_v47 }
  0xa3   :  { %2642 = vmatmul.mubr.f32.vlgmr.msra.gmra.mrb[0].mxu0 %v4795_v9  ;;  %v4827_v9 = vand.u32 4294901760, %v4810_v40 }
  0xa4   :  { %3154 = vmatpush3.bf16.msra.mxu0 %v4793_v28  ;;  %2644 = vmatprep.mubr.f32.mxu0 %v4796_v25  ;;  %v4828_v25 = vand.u32 4294901760, %v4811_v16 }
  0xa5   :  { %3156 = vmatprep.subr.bf16.mxu0 %v4797_v54 }
  0xa7   :  { %2645 = vmatmul.mubr.f32.gmra.mrb[2].mxu0 %v4798_v50  ;;  %v4830_v50 = vand.u32 4294901760, %v4063_v1 }
  0xa8   :  { %3158 = vmatpush3.bf16.msra.mxu0 %v4797_v54  ;;  %2647 = vmatprep.mubr.f32.mxu0 %v4799_v7 }
  0xa9   :  { %3160 = vmatprep.subr.bf16.mxu0 %v4800_v14 }
  0xab   :  { %2648 = vmatmul.mubr.f32.gmra.mrb[4].mxu0 %v4801_v53 }
  0xac   :  { %3162 = vmatpush3.bf16.msra.mxu0 %v4800_v14  ;;  %2650 = vmatprep.mubr.f32.mxu0 %v4802_v4 }
  0xad   :  { %3164 = vmatprep.subr.bf16.mxu0 %v4803_v44 }
  0xaf   :  { %2651 = vmatmul.mubr.f32.gmra.mrb[6].mxu0 %v4804_v15 }
  0xb0   :  { %2653 = vmatprep.mubr.f32.mxu0 %v4805_v58  ;;  %3166 = vmatpush3.bf16.msra.mxu0 %v4803_v44 }
  0xb1   :  { %3168 = vmatprep.subr.bf16.mxu0 %v4806_v57 }
  0xb3   :  { %2654 = vmatmul.mubr.f32.gmra.mrb[8].mxu0 %v4807_v47 }
  0xb4   :  { %2656 = vmatprep.mubr.f32.mxu0 %v4808_v51  ;;  %3170 = vmatpush3.bf16.msra.mxu0 %v4806_v57 }
  0xb5   :  { %3172 = vmatprep.subr.bf16.mxu0 %v4809_v45 }
  0xb7   :  { %2657 = vmatmul.mubr.f32.gmra.mrb[10].mxu0 %v4810_v40 }
  0xb8   :  { %2659 = vmatprep.mubr.f32.mxu0 %v4811_v16  ;;  %3174 = vmatpush3.bf16.msra.mxu0 %v4809_v45 }
  0xb9   :  { %3176 = vmatprep.subr.bf16.mxu0 %v4812_v3 }
  0xbb   :  { %2660 = vmatmul.mubr.f32.gmra.mrb[12].mxu0 %v4060_v38 }
  0xbc   :  { %2662 = vmatprep.mubr.f32.mxu0 %v4063_v1  ;;  %3178 = vmatpush3.bf16.msra.mxu0 %v4812_v3  ;;  %v4732_v1 = vmov 0.0  }
  0xbd   :  { %3180 = vmatprep.subr.bf16.mxu0 %v4813_v11  ;;  %2877 = vmatprep.mubr.msk.f32.mxu1 %vm3619_vm0, %v4732_v1 }
  0xbf   :  { %2663 = vmatmul.mubr.f32.gmra.mrb[14].mxu0 %v4099_v8 }
  0xc0   :  { %2665 = vmatprep.mubr.f32.mxu0 %v4102_v36  ;;  %3182 = vmatpush3.bf16.msra.mxu0 %v4813_v11 }
  0xc1   :  { %3184 = vmatprep.subr.bf16.mxu0 %v4814_v46 }
  0xc3   :  { %2666 = vmatmul.mubr.f32.gmra.mrb[16].mxu0 %v4154_v37 }
  0xc4   :  { %2700 = vmatprep.mubr.f32.mxu0 %v4815_v63 }
  0xc7   :  { %2701 = vmatmul.mubr.f32.vlgmr.msra.gmra.mrb[0].mxu0 %v4816_v22 }
  0xc8   :  { %3186 = vmatpush3.bf16.msra.mxu0 %v4814_v46  ;;  %2703 = vmatprep.mubr.f32.mxu0 %v4817_v13 }
  0xc9   :  { %3188 = vmatprep.subr.bf16.mxu0 %v4818_v29 }
  0xcb   :  { %2704 = vmatmul.mubr.f32.gmra.mrb[2].mxu0 %v4819_v30 }
  0xcc   :  { %3190 = vmatpush3.bf16.msra.mxu0 %v4818_v29  ;;  %2706 = vmatprep.mubr.f32.mxu0 %v4820_v42 }
  0xcd   :  { %3192 = vmatprep.subr.bf16.mxu0 %v4122_v12 }
  0xcf   :  { %2707 = vmatmul.mubr.f32.gmra.mrb[4].mxu0 %v4821_v43 }
  0xd0   :  { %3194 = vmatpush3.bf16.msra.mxu0 %v4122_v12  ;;  %2709 = vmatprep.mubr.f32.mxu0 %v4822_v59  ;;  %v4826_v12 = vand.u32 4294901760, %v4808_v51 }
  0xd1   :  { %3196 = vmatprep.subr.bf16.mxu0 %v4128_v48 }
  0xd3   :  { %2710 = vmatmul.mubr.f32.gmra.mrb[6].mxu0 %v4823_v39 }
  0xd4   :  { %2712 = vmatprep.mubr.f32.mxu0 %v4824_v2  ;;  %3198 = vmatpush3.bf16.msra.mxu0 %v4128_v48  ;;  %v4829_v48 = vand.u32 4294901760, %v4060_v38  ;;  %v3618_v38 = vmov 0.0|0.0  }
  0xd5   :  { %3200 = vmatprep.subr.bf16.mxu0 %v4134_v34  ;;  %3247 = vmatprep.subr.bf16.mxu1 %v3618_v38 }
  0xd7   :  { %2713 = vmatmul.mubr.f32.gmra.mrb[8].mxu0 %v4825_v6 }
  0xd8   :  { %2715 = vmatprep.mubr.f32.mxu0 %v4826_v12  ;;  %3202 = vmatpush3.bf16.msra.mxu0 %v4134_v34 }
  0xd9   :  { %3204 = vmatprep.subr.bf16.mxu0 %v4140_v33 }
  0xdb   :  { %2716 = vmatmul.mubr.f32.gmra.mrb[10].mxu0 %v4827_v9 }
  0xdc   :  { %2718 = vmatprep.mubr.f32.mxu0 %v4828_v25  ;;  %3206 = vmatpush3.bf16.msra.mxu0 %v4140_v33 }
  0xdd   :  { %3208 = vmatprep.subr.bf16.mxu0 %v4143_v27 }
  0xdf   :  { %2719 = vmatmul.mubr.f32.gmra.mrb[12].mxu0 %v4829_v48 }
  0xe0   :  { %2721 = vmatprep.mubr.f32.mxu0 %v4830_v50  ;;  %3210 = vmatpush3.bf16.msra.mxu0 %v4143_v27 }
  0xe1   :  { %3212 = vmatprep.subr.bf16.mxu0 %v4145_v20 }
  0xe3   :  { %2722 = vmatmul.mubr.f32.gmra.mrb[14].mxu0 %v324_v19 }
  0xe4   :  { %2724 = vmatprep.mubr.f32.mxu0 %v334_v32  ;;  %3214 = vmatpush3.bf16.msra.mxu0 %v4145_v20 }
  0xe5   :  { %3216 = vmatprep.subr.bf16.mxu0 %v4793_v28 }
  0xe7   :  { %2725 = vmatmul.mubr.f32.gmra.mrb[16].mxu0 %v344_v56 }
  0xe8   :  { %2759 = vmatprep.mubr.f32.mxu0 %v3707_v17 }
  0xeb   :  { %2760 = vmatmul.mubr.f32.vlgmr.msra.gmra.mrb[0].mxu0 %v3727_v26 }
  0xec   :  { %3218 = vmatpush3.bf16.msra.mxu0 %v4793_v28  ;;  %2762 = vmatprep.mubr.f32.mxu0 %v3737_v31 }
  0xed   :  { %3220 = vmatprep.subr.bf16.mxu0 %v4797_v54 }
  0xef   :  { %2763 = vmatmul.mubr.f32.gmra.mrb[2].mxu0 %v3759_v41 }
  0xf0   :  { %3222 = vmatpush3.bf16.msra.mxu0 %v4797_v54  ;;  %2765 = vmatprep.mubr.f32.mxu0 %v3785_v52 }
  0xf1   :  { %3224 = vmatprep.subr.bf16.mxu0 %v4800_v14 }
  0xf3   :  { %2766 = vmatmul.mubr.f32.gmra.mrb[4].mxu0 %v3807_v0 }
  0xf4   :  { %3226 = vmatpush3.bf16.msra.mxu0 %v4800_v14  ;;  %2768 = vmatprep.mubr.f32.mxu0 %v3864_v60 }
  0xf5   :  { %3228 = vmatprep.subr.bf16.mxu0 %v4803_v44 }
  0xf7   :  { %2769 = vmatmul.mubr.f32.gmra.mrb[6].mxu0 %v3866_v61 }
  0xf8   :  { %2771 = vmatprep.mubr.f32.mxu0 %v3897_v21  ;;  %3230 = vmatpush3.bf16.msra.mxu0 %v4803_v44 }
  0xf9   :  { %3232 = vmatprep.subr.bf16.mxu0 %v4806_v57 }
  0xfb   :  { %2772 = vmatmul.mubr.f32.gmra.mrb[8].mxu0 %v3925_v18 }
  0xfc   :  { %2774 = vmatprep.mubr.f32.mxu0 %v3946_v55  ;;  %3234 = vmatpush3.bf16.msra.mxu0 %v4806_v57 }
  0xfd   :  { %3236 = vmatprep.subr.bf16.mxu0 %v4809_v45 }
  0xff   :  { %2775 = vmatmul.mubr.f32.gmra.mrb[10].mxu0 %v3969_v62 }
 0x100   :  { %2777 = vmatprep.mubr.f32.mxu0 %v3971_v5  ;;  %3238 = vmatpush3.bf16.msra.mxu0 %v4809_v45 }
 0x101   :  { %3240 = vmatprep.subr.bf16.mxu0 %v4812_v3 }
 0x103   :  { %2778 = vmatmul.mubr.f32.gmra.mrb[12].mxu0 %v4028_v23 }
 0x104   :  { %2780 = vmatprep.mubr.f32.mxu0 %v4030_v49  ;;  %3242 = vmatpush3.bf16.msra.mxu0 %v4812_v3 }
 0x105   :  { %3244 = vmatprep.subr.bf16.mxu0 %v4813_v11 }
 0x107   :  { %2781 = vmatmul.mubr.f32.gmra.mrb[14].mxu0 %v4067_v24 }
 0x108   :  { %2783 = vmatprep.mubr.f32.mxu0 %v4069_v35  ;;  %3246 = vmatpush3.bf16.msra.mxu0 %v4813_v11 }
 0x10b   :  { %2784 = vmatmul.mubr.f32.gmra.mrb[16].mxu0 %v4093_v10 }
 0x10c   :  { %2818 = vmatprep.mubr.f32.mxu0 %v3707_v17 }
 0x10f   :  { %2819 = vmatmul.mubr.f32.vlgmr.msra.gmra.mrb[0].mxu0 %v3727_v26 }
 0x12e   :  { %v2823_v31 = vpop.f32.mrb[0].mxu1 }
 0x12f   :  { %v1364_v41 = vpop.f32.mrb[1].mxu1 }
 0x132   :  { %v2826_v52 = vpop.f32.mrb[2].mxu1 }
 0x133   :  { %v1376_v60 = vpop.f32.mrb[3].mxu1 }
 0x136   :  { %v2829_v61 = vpop.f32.mrb[4].mxu1 }
 0x137   :  { %v1388_v0 = vpop.f32.mrb[5].mxu1 }
 0x13a   :  { %v2832_v5 = vpop.f32.mrb[6].mxu1 }
 0x13b   :  { %v1400_v21 = vpop.f32.mrb[7].mxu1 }
 0x13e   :  { %v4333_v18 = vpop.f32.mrb[8].mxu1 }
 0x13f   :  { %v4335_v55 = vpop.f32.mrb[9].mxu1 }
 0x142   :  { %v4337_v62 = vpop.f32.mrb[10].mxu1 }
 0x143   :  { %v4339_v23 = vpop.f32.mrb[11].mxu1 }
 0x146   :  { %v4341_v10 = vpop.f32.mrb[12].mxu1 }
 0x147   :  { %v4343_v17 = vpop.f32.mrb[13].mxu1 }
 0x14a   :  { %v2844_v26 = vpop.f32.mrb[14].mxu1 }
 0x14b   :  { %v4345_v49 = vpop.f32.mrb[15].mxu1 }
 0x1c2   :  { %v2764_v24 = vpop.f32.mrb[2].mxu0 }
 0x1c3   :  { %v3407_v35 = vadd.f32 %v2823_v31, %v2764_v24  ;;  %v1176_v8 = vpop.f32.mrb[3].mxu0 }
 0x1c4   :  { %v3408_v36 = vadd.f32 %v1364_v41, %v1176_v8 }
 0x1c5   :  { %v1460_v34 = vmul.f32 0.01, %v3407_v35 }
 0x1c6   :  { %v1459_v33 = vmul.f32 0.01, %v3408_v36  ;;  %v2767_v27 = vpop.f32.mrb[4].mxu0 }
 0x1c7   :  { %v1476_v20 = vmax.f32 %v3407_v35, %v1460_v34  ;;  %v3409_v19 = vadd.f32 %v2826_v52, %v2767_v27  ;;  %v1188_v37 = vpop.f32.mrb[5].mxu0 }
 0x1c8   :  { %v1475_v32 = vmax.f32 %v3408_v36, %v1459_v33  ;;  %v3410_v56 = vadd.f32 %v1376_v60, %v1188_v37 }
 0x1c9   :  { %v1500_v28 = vand.u32 4294901760, %v1476_v20  ;;  %v1462_v54 = vmul.f32 0.01, %v3409_v19 }
 0x1ca   :  { %v1497_v7 = vand.u32 4294901760, %v1475_v32  ;;  %v1461_v14 = vmul.f32 0.01, %v3410_v56  ;;  %v2770_v53 = vpop.f32.mrb[6].mxu0 }
 0x1cb   :  { %v4350_v4 = vsub.f32 %v1476_v20, %v1500_v28  ;;  %v1478_v44 = vmax.f32 %v3409_v19, %v1462_v54  ;;  %v3411_v15 = vadd.f32 %v2829_v61, %v2770_v53  ;;  %v1200_v58 = vpop.f32.mrb[7].mxu0 }
 0x1cc   :  { %v4352_v57 = vpack.c.bf16 %v1500_v28, %v1497_v7  ;;  %v4354_v47 = vsub.f32 %v1475_v32, %v1497_v7  ;;  %v1477_v51 = vmax.f32 %v3410_v56, %v1461_v14  ;;  %v3412_v45 = vadd.f32 %v1388_v0, %v1200_v58 }
 0x1cd   :  { %v1605_v40 = vand.u32 4294901760, %v4350_v4  ;;  %v1506_v16 = vand.u32 4294901760, %v1478_v44  ;;  %v1464_v3 = vmul.f32 0.01, %v3411_v15 }
 0x1ce   :  { %v1598_v11 = vand.u32 4294901760, %v4354_v47  ;;  %v1503_v46 = vand.u32 4294901760, %v1477_v51  ;;  %v1463_v63 = vmul.f32 0.01, %v3412_v45  ;;  %v2773_v22 = vpop.f32.mrb[8].mxu0 }
 0x1cf   :  { %v1606_v29 = vsub.f32 %v4350_v4, %v1605_v40  ;;  %v4363_v30 = vsub.f32 %v1478_v44, %v1506_v16  ;;  %v1480_v42 = vmax.f32 %v3411_v15, %v1464_v3  ;;  %v3413_v43 = vadd.f32 %v2832_v5, %v2773_v22  ;;  %v1212_v59 = vpop.f32.mrb[9].mxu0 }
 0x1d0   :  { %v1599_v39 = vsub.f32 %v4354_v47, %v1598_v11  ;;  %v4368_v2 = vpack.c.bf16 %v1506_v16, %v1503_v46  ;;  %v4370_v6 = vsub.f32 %v1477_v51, %v1503_v46  ;;  %v1479_v12 = vmax.f32 %v3412_v45, %v1463_v63 }
 0x1d1   :  { %v1619_v9 = vand.u32 4294901760, %v4363_v30  ;;  %v1512_v25 = vand.u32 4294901760, %v1480_v42  ;;  %v1466_v48 = vmul.f32 0.01, %v3413_v43  ;;  %v3414_v50 = vadd.f32 %v1400_v21, %v1212_v59 }
 0x1d2   :  { %v1612_v31 = vand.u32 4294901760, %v4370_v6  ;;  %v1509_v41 = vand.u32 4294901760, %v1479_v12  ;;  %v2776_v52 = vpop.f32.mrb[10].mxu0  ;;  %v1600_v60 = vand.u32 4294901760, %v1599_v39  ;;  %v1607_v61 = vand.u32 4294901760, %v1606_v29 }
 0x1d3   :  { %v4374_v0 = vsub.f32 %v1480_v42, %v1512_v25  ;;  %v1482_v5 = vmax.f32 %v3413_v43, %v1466_v48  ;;  %v1465_v26 = vmul.f32 0.01, %v3414_v50  ;;  %v1224_v24 = vpop.f32.mrb[11].mxu0  ;;  %v3415_v21 = vadd.f32 %v4333_v18, %v2776_v52 }
 0x1d4   :  { %v4379_v35 = vsub.f32 %v4370_v6, %v1612_v31  ;;  %v4381_v8 = vpack.c.bf16 %v1512_v25, %v1509_v41  ;;  %v4383_v36 = vsub.f32 %v1479_v12, %v1509_v41  ;;  %v3416_v27 = vadd.f32 %v4335_v55, %v1224_v24 }
 0x1d5   :  { %v1518_v34 = vand.u32 4294901760, %v1482_v5  ;;  %v1481_v33 = vmax.f32 %v3414_v50, %v1465_v26  ;;  %v1620_v20 = vsub.f32 %v4363_v30, %v1619_v9  ;;  %v1633_v19 = vand.u32 4294901760, %v4374_v0 }
 0x1d6   :  { %v1468_v37 = vmul.f32 0.01, %v3415_v21  ;;  %v2779_v32 = vpop.f32.mrb[12].mxu0  ;;  %v4391_v56 = vpack.c.bf16 %v1607_v61, %v1600_v60  ;;  %v1626_v28 = vand.u32 4294901760, %v4383_v36  ;;  %v1467_v18 = vmul.f32 0.01, %v3416_v27 }
 0x1d7   :  { %v4394_v54 = vsub.f32 %v1482_v5, %v1518_v34  ;;  %v1515_v7 = vand.u32 4294901760, %v1481_v33  ;;  %v1236_v14 = vpop.f32.mrb[13].mxu0  ;;  %v3417_v55 = vadd.f32 %v4337_v62, %v2779_v32  ;;  %v1614_v15 = vand.u32 4294901760, %v4379_v35 }
 0x1d8   :  { %v1484_v53 = vmax.f32 %v3415_v21, %v1468_v37  ;;  %v3418_v44 = vadd.f32 %v4339_v23, %v1236_v14  ;;  %v1483_v16 = vmax.f32 %v3416_v27, %v1467_v18  ;;  %v1634_v62 = vsub.f32 %v4374_v0, %v1633_v19 }
 0x1d9   :  { %v1647_v58 = vand.u32 4294901760, %v4394_v54  ;;  %v4400_v51 = vpack.c.bf16 %v1518_v34, %v1515_v7  ;;  %v4402_v45 = vsub.f32 %v1481_v33, %v1515_v7  ;;  %v1470_v46 = vmul.f32 0.01, %v3417_v55 }
 0x1da   :  { %v1524_v3 = vand.u32 4294901760, %v1484_v53  ;;  %v1469_v63 = vmul.f32 0.01, %v3418_v44  ;;  %v2782_v22 = vpop.f32.mrb[14].mxu0  ;;  %v1627_v23 = vsub.f32 %v4383_v36, %v1626_v28  ;;  %v1521_v42 = vand.u32 4294901760, %v1483_v16 }
 0x1db   :  { %v3419_v43 = vadd.f32 %v4341_v10, %v2782_v22  ;;  %v1248_v59 = vpop.f32.mrb[15].mxu0  ;;  %v1486_v12 = vmax.f32 %v3417_v55, %v1470_v46  ;;  %v1640_v50 = vand.u32 4294901760, %v4402_v45  ;;  %v1648_v61 = vsub.f32 %v4394_v54, %v1647_v58 }
 0x1dc   :  { %v4413_v39 = vsub.f32 %v1484_v53, %v1524_v3  ;;  %v1485_v25 = vmax.f32 %v3418_v44, %v1469_v63  ;;  %v3420_v48 = vadd.f32 %v4343_v17, %v1248_v59  ;;  %v4417_v41 = vpack.c.bf16 %v1524_v3, %v1521_v42 }
 0x1dd   :  { %v4419_v52 = vsub.f32 %v1483_v16, %v1521_v42  ;;  %v1472_v60 = vmul.f32 0.01, %v3419_v43  ;;  %v1530_v5 = vand.u32 4294901760, %v1486_v12  ;;  %v1621_v33 = vand.u32 4294901760, %v1620_v20 }
 0x1de   :  { %v1527_v10 = vand.u32 4294901760, %v1485_v25  ;;  %v1471_v26 = vmul.f32 0.01, %v3420_v48  ;;  %v2785_v24 = vpop.f32.mrb[16].mxu0  ;;  %v4734_v35 = vand.u32 4294901760, %v4413_v39  ;;  %v1628_v7 = vand.u32 4294901760, %v1627_v23 }
 0x1df   :  { %v1654_v21 = vand.u32 4294901760, %v4419_v52  ;;  %v1488_v17 = vmax.f32 %v3419_v43, %v1472_v60  ;;  %v1260_v34 = vpop.f32.mrb[17].mxu0  ;;  %v4426_v27 = vsub.f32 %v1486_v12, %v1530_v5  ;;  %v1641_v18 = vsub.f32 %v4402_v45, %v1640_v50 }
 0x1e0   :  { %v4428_v37 = vpack.c.bf16 %v1530_v5, %v1527_v10  ;;  %v4430_v32 = vsub.f32 %v1485_v25, %v1527_v10  ;;  %v1487_v53 = vmax.f32 %v3420_v48, %v1471_v26  ;;  %v4436_v55 = vadd.f32 %v4345_v49, %v1260_v34 }
 0x1e1   :  { %v1536_v14 = vand.u32 4294901760, %v1488_v17  ;;  %v1675_v44 = vand.u32 4294901760, %v4426_v27  ;;  %v4440_v3 = vpack.c.bf16 %v1621_v33, %v1614_v15  ;;  %v1635_v46 = vand.u32 4294901760, %v1634_v62 }
 0x1e2   :  { %v1668_v20 = vand.u32 4294901760, %v4430_v32  ;;  %v2820_v16 = vpop.f32.mrb[0].mxu0  ;;  %v1655_v63 = vsub.f32 %v4419_v52, %v1654_v21  ;;  %v1533_v23 = vand.u32 4294901760, %v1487_v53  ;;  %v1662_v49 = vsub.f32 %v4413_v39, %v4734_v35 }
 0x1e3   :  { %v4445_v22 = vsub.f32 %v1488_v17, %v1536_v14  ;;  %v1458_v42 = vmul.f32 0.01, %v2820_v16  ;;  %v1352_v43 = vpop.f32.mrb[1].mxu0  ;;  %v1676_v59 = vsub.f32 %v4426_v27, %v1675_v44  ;;  %v4451_v25 = vpack.c.bf16 %v1635_v46, %v1628_v7 }
 0x1e4   :  { %v1457_v12 = vmul.f32 0.01, %v1352_v43  ;;  %v1669_v15 = vsub.f32 %v4430_v32, %v1668_v20  ;;  %v4455_v48 = vpack.c.bf16 %v1536_v14, %v1533_v23  ;;  %v4457_v60 = vsub.f32 %v1487_v53, %v1533_v23 }
 0x1e5   :  { %v1689_v62 = vand.u32 4294901760, %v4445_v22  ;;  %v1474_v5 = vmax.f32 %v2820_v16, %v1458_v42  ;;  %v1642_v26 = vand.u32 4294901760, %v1641_v18  ;;  %v1649_v34 = vand.u32 4294901760, %v1648_v61 }
 0x1e6   :  { %v1473_v10 = vmax.f32 %v1352_v43, %v1457_v12  ;;  %v1682_v17 = vand.u32 4294901760, %v4457_v60  ;;  %v1656_v33 = vand.u32 4294901760, %v1655_v63  ;;  %v1663_v46 = vand.u32 4294901760, %v1662_v49 }
 0x1e7   :  { %v1690_v24 = vsub.f32 %v4445_v22, %v1689_v62  ;;  %v1494_v29 = vand.u32 4294901760, %v1474_v5  ;;  %v4462_v1 = vpack.c.bf16 %v1649_v34, %v1642_v26  ;;  %v1670_v14 = vand.u32 4294901760, %v1669_v15 }
 0x1e8   :  { %v1491_v7 = vand.u32 4294901760, %v1473_v10  ;;  %v1683_v13 = vsub.f32 %v4457_v60, %v1682_v17  ;;  %v1677_v35 = vand.u32 4294901760, %v1676_v59  ;;  %v3287_v23 = vpack.c.bf16 %v1663_v46, %v1656_v33 }
 0x1e9   :  { %v4464_v53 = vsub.f32 %v1474_v5, %v1494_v29  ;;  %v1691_v61 = vand.u32 4294901760, %v1690_v24  ;;  %v3317_v26 = vpack.c.bf16 %v4445_v22, %v4457_v60  ;;  %v4494_v34 = vpack.c.bf16 %v1605_v40, %v1598_v11 }
 0x1ea   :  { %v4466_v16 = vpack.c.bf16 %v1494_v29, %v1491_v7  ;;  %v4468_v18 = vsub.f32 %v1473_v10, %v1491_v7  ;;  %v3290_v42 = vpack.c.bf16 %v1677_v35, %v1670_v14  ;;  %v1684_v43 = vand.u32 4294901760, %v1683_v13 }
 0x1eb   :  { %v1591_v63 = vand.u32 4294901760, %v4464_v53  ;;  %v3305_v29 = vpack.c.bf16 %v4374_v0, %v4383_v36  ;;  %v3308_v35 = vpack.c.bf16 %v4394_v54, %v4402_v45  ;;  %v3311_v13 = vpack.c.bf16 %v4413_v39, %v4419_v52 }
 0x1ec   :  { %v1584_v49 = vand.u32 4294901760, %v4468_v18  ;;  %v3296_v12 = vpack.c.bf16 %v4464_v53, %v4468_v18  ;;  %3249 = vmatpush3.bf16.msra.mxu1 %v4466_v16  ;;  %v3293_v59 = vpack.c.bf16 %v1691_v61, %v1684_v43  ;;  %v3314_v10 = vpack.c.bf16 %v4426_v27, %v4430_v32 }
 0x1ed   :  { %3250 = vmatprep.subr.bf16.mxu1 %v3618_v38  ;;  %v1592_v15 = vsub.f32 %v4464_v53, %v1591_v63  ;;  %v4500_v33 = vpack.c.bf16 %v1619_v9, %v1612_v31  ;;  %v4507_v14 = vpack.c.bf16 %v1633_v19, %v1626_v28  ;;  %v4513_v40 = vpack.c.bf16 %v1647_v58, %v1640_v50  ;;  %v1489_v28 = vld [vmem:[%s4666_s3] sm:$0x3]  ;;  %s3621_s3 = smov [#allocation8]  }
 0x1ee   :  { %v1585_v5 = vsub.f32 %v4468_v18, %v1584_v49  ;;  %v4488_v24 = vpack.c.bf16 %v1591_v63, %v1584_v49  ;;  %v4831_v11 = vand.u32 4294901760, %v4413_v39  ;;  %v4522_v31 = vpack.c.bf16 %v1675_v44, %v1668_v20  ;;  %s2175_s26 = sshll.u32 %s3621_s3, 4  ;;  %s2176_s26 = int_to_ptr.vmem [resolvable:$true] %s2175_s26 }
 0x1ef   :  { %v1593_v7 = vand.u32 4294901760, %v1592_v15  ;;  %v4524_v53 = vpack.c.bf16 %v1689_v62, %v1682_v17  ;;  %v4531_v58 = vand.u32 4294901760, %v1489_v28  ;;  %v4832_v62 = vmov 0.0   ;;  %s3585_s27 = scalar_lea.vmem %s2176_s26, 16  ;;  %s3589_s28 = scalar_lea.vmem %s2176_s26, 32 }
 0x1f0   :  { %v1586_v46 = vand.u32 4294901760, %v1585_v5  ;;  %3252 = vmatpush3.bf16.msra.mxu1 %v4352_v57  ;;  %v4520_v9 = vpack.c.bf16 %v4831_v11, %v1654_v21  ;;  %p3586_p10 = scmp.ne.s32.totalorder %s2176_s26, %s3585_s27  ;;  %p3590_p11 = scmp.lt.s32.totalorder %s2176_s26, %s2176_s26 }
 0x1f1   :  { %3253 = vmatprep.subr.bf16.mxu1 %v3618_v38  ;;  %v4536_v50 = vsub.f32 %v1489_v28, %v4531_v58  ;;  %p3591_p12 = scmp.lt.s32.totalorder %s3589_s28, %s3585_s27 }
 0x1f2   :  { %v3272_v19 = vpack.c.bf16 %v1593_v7, %v1586_v46 }
 0x1f3   :  { %v1573_v21 = vand.u32 4294901760, %v4536_v50  ;;  %p3592_p13 = por %p3591_p12, %p3590_p11 }
 0x1f4   :  { %3255 = vmatpush3.bf16.msra.mxu1 %v4368_v2 }
 0x1f5   :  { %3256 = vmatprep.subr.bf16.mxu1 %v3618_v38  ;;  %v1574_v44 = vsub.f32 %v4536_v50, %v1573_v21  ;;  %p3593_p0 = pnand %p3592_p13, %p3586_p10 }
 0x1f7   :  { %v1575_v20 = vand.u32 4294901760, %v1574_v44 }
 0x1f8   :  { %3258 = vmatpush3.bf16.msra.mxu1 %v4381_v8 }
 0x1f9   :  { %3259 = vmatprep.subr.bf16.mxu1 %v3618_v38 }
 0x1fc   :  { %3261 = vmatpush3.bf16.msra.mxu1 %v4400_v51 }
 0x1fd   :  { %3262 = vmatprep.subr.bf16.mxu1 %v3618_v38 }
 0x200   :  { %3264 = vmatpush3.bf16.msra.mxu1 %v4417_v41 }
 0x201   :  { %3265 = vmatprep.subr.bf16.mxu1 %v3618_v38 }
 0x204   :  { %3267 = vmatpush3.bf16.msra.mxu1 %v4428_v37 }
 0x205   :  { %3268 = vmatprep.subr.bf16.mxu1 %v3618_v38 }
 0x208   :  { %3270 = vmatpush3.bf16.msra.mxu1 %v4455_v48 }
 0x209   :  { %3271 = vmatprep.subr.bf16.mxu1 %v3618_v38 }
 0x20b   :  { %2878 = vmatmul.mubr.f32.vlgmr.msra.gmra.mrb[16].mxu1 %v1575_v20 }
 0x20c   :  { %3273 = vmatpush3.bf16.msra.mxu1 %v3272_v19  ;;  %2912 = vmatprep.mubr.msk.f32.mxu1 %vm3619_vm0, %v4832_v62 }
 0x20d   :  { %3274 = vmatprep.subr.bf16.mxu1 %v3618_v38 }
 0x210   :  { %3276 = vmatpush3.bf16.msra.mxu1 %v4391_v56  ;;  %v4834_v56 = vpack.c.bf16 %v4363_v30, %v4370_v6 }
 0x211   :  { %3277 = vmatprep.subr.bf16.mxu1 %v3618_v38 }
 0x214   :  { %3279 = vmatpush3.bf16.msra.mxu1 %v4440_v3 }
 0x215   :  { %3280 = vmatprep.subr.bf16.mxu1 %v3618_v38 }
 0x218   :  { %3282 = vmatpush3.bf16.msra.mxu1 %v4451_v25 }
 0x219   :  { %3283 = vmatprep.subr.bf16.mxu1 %v3618_v38 }
 0x21c   :  { %3285 = vmatpush3.bf16.msra.mxu1 %v4462_v1  ;;  %v4833_v1 = vpack.c.bf16 %v4350_v4, %v4354_v47  ;;  %v2131_v4 = vld [vmem:[#allocation5] sm:$0x7] }
 0x21d   :  { %3286 = vmatprep.subr.bf16.mxu1 %v3618_v38  ;;  %v2161_v60 = vrot.slane %v2131_v4, 1 }
 0x220   :  { %3288 = vmatpush3.bf16.msra.mxu1 %v3287_v23 }
 0x221   :  { %3289 = vmatprep.subr.bf16.mxu1 %v3618_v38 }
 0x224   :  { %3291 = vmatpush3.bf16.msra.mxu1 %v3290_v42 }
 0x225   :  { %3292 = vmatprep.subr.bf16.mxu1 %v3618_v38 }
 0x228   :  { %3294 = vmatpush3.bf16.msra.mxu1 %v3293_v59 }
 0x229   :  { %3295 = vmatprep.subr.bf16.mxu1 %v3618_v38 }
 0x22b   :  { %2913 = vmatmul.mubr.f32.vlgmr.msra.gmra.mrb[16].mxu1 %v4531_v58 }
 0x22c   :  { %3297 = vmatpush3.bf16.msra.mxu1 %v3296_v12  ;;  %2947 = vmatprep.mubr.msk.f32.mxu1 %vm3619_vm0, %v4832_v62 }
 0x22d   :  { %3298 = vmatprep.subr.bf16.mxu1 %v3618_v38 }
 0x230   :  { %3300 = vmatpush3.bf16.msra.mxu1 %v4833_v1 }
 0x231   :  { %3301 = vmatprep.subr.bf16.mxu1 %v3618_v38 }
 0x234   :  { %3303 = vmatpush3.bf16.msra.mxu1 %v4834_v56 }
 0x235   :  { %3304 = vmatprep.subr.bf16.mxu1 %v3618_v38 }
 0x238   :  { %3306 = vmatpush3.bf16.msra.mxu1 %v3305_v29 }
 0x239   :  { %3307 = vmatprep.subr.bf16.mxu1 %v3618_v38 }
 0x23c   :  { %3309 = vmatpush3.bf16.msra.mxu1 %v3308_v35 }
 0x23d   :  { %3310 = vmatprep.subr.bf16.mxu1 %v3618_v38 }
 0x240   :  { %3312 = vmatpush3.bf16.msra.mxu1 %v3311_v13 }
 0x241   :  { %3313 = vmatprep.subr.bf16.mxu1 %v3618_v38 }
 0x244   :  { %3315 = vmatpush3.bf16.msra.mxu1 %v3314_v10 }
 0x245   :  { %3316 = vmatprep.subr.bf16.mxu1 %v3618_v38 }
 0x248   :  { %3318 = vmatpush3.bf16.msra.mxu1 %v3317_v26 }
 0x249   :  { %3319 = vmatprep.subr.bf16.mxu1 %v3618_v38 }
 0x24b   :  { %2948 = vmatmul.mubr.f32.vlgmr.msra.gmra.mrb[16].mxu1 %v4536_v50 }
 0x24c   :  { %3321 = vmatpush3.bf16.msra.mxu1 %v4466_v16  ;;  %2982 = vmatprep.mubr.msk.f32.mxu1 %vm3619_vm0, %v4832_v62 }
 0x24d   :  { %3322 = vmatprep.subr.bf16.mxu1 %v3618_v38 }
 0x250   :  { %3324 = vmatpush3.bf16.msra.mxu1 %v4352_v57 }
 0x251   :  { %3325 = vmatprep.subr.bf16.mxu1 %v3618_v38 }
 0x254   :  { %3327 = vmatpush3.bf16.msra.mxu1 %v4368_v2 }
 0x255   :  { %3328 = vmatprep.subr.bf16.mxu1 %v3618_v38 }
 0x258   :  { %3330 = vmatpush3.bf16.msra.mxu1 %v4381_v8 }
 0x259   :  { %3331 = vmatprep.subr.bf16.mxu1 %v3618_v38 }
 0x25c   :  { %3333 = vmatpush3.bf16.msra.mxu1 %v4400_v51 }
 0x25d   :  { %3334 = vmatprep.subr.bf16.mxu1 %v3618_v38 }
 0x260   :  { %3336 = vmatpush3.bf16.msra.mxu1 %v4417_v41 }
 0x261   :  { %3337 = vmatprep.subr.bf16.mxu1 %v3618_v38 }
 0x264   :  { %3339 = vmatpush3.bf16.msra.mxu1 %v4428_v37 }
 0x265   :  { %3340 = vmatprep.subr.bf16.mxu1 %v3618_v38 }
 0x268   :  { %3342 = vmatpush3.bf16.msra.mxu1 %v4455_v48 }
 0x269   :  { %3343 = vmatprep.subr.bf16.mxu1 %v3618_v38 }
 0x26b   :  { %2983 = vmatmul.mubr.f32.vlgmr.msra.gmra.mrb[16].mxu1 %v1573_v21 }
 0x26c   :  { %3345 = vmatpush3.bf16.msra.mxu1 %v4488_v24  ;;  %3017 = vmatprep.mubr.msk.f32.mxu1 %vm3619_vm0, %v4832_v62 }
 0x26d   :  { %3346 = vmatprep.subr.bf16.mxu1 %v3618_v38 }
 0x270   :  { %3348 = vmatpush3.bf16.msra.mxu1 %v4494_v34 }
 0x271   :  { %3349 = vmatprep.subr.bf16.mxu1 %v3618_v38 }
 0x274   :  { %3351 = vmatpush3.bf16.msra.mxu1 %v4500_v33 }
 0x275   :  { %3352 = vmatprep.subr.bf16.mxu1 %v3618_v38 }
 0x278   :  { %3354 = vmatpush3.bf16.msra.mxu1 %v4507_v14 }
 0x279   :  { %3355 = vmatprep.subr.bf16.mxu1 %v3618_v38 }
 0x27c   :  { %3357 = vmatpush3.bf16.msra.mxu1 %v4513_v40 }
 0x27d   :  { %3358 = vmatprep.subr.bf16.mxu1 %v3618_v38 }
 0x280   :  { %3360 = vmatpush3.bf16.msra.mxu1 %v4520_v9 }
 0x281   :  { %3361 = vmatprep.subr.bf16.mxu1 %v3618_v38 }
 0x284   :  { %3363 = vmatpush3.bf16.msra.mxu1 %v4522_v31 }
 0x285   :  { %3364 = vmatprep.subr.bf16.mxu1 %v3618_v38 }
 0x288   :  { %3366 = vmatpush3.bf16.msra.mxu1 %v4524_v53 }
 0x289   :  { %3367 = vmatprep.subr.bf16.mxu1 %v3618_v38 }
 0x28b   :  { %3018 = vmatmul.mubr.f32.vlgmr.msra.gmra.mrb[16].mxu1 %v4531_v58 }
 0x28c   :  { %3369 = vmatpush3.bf16.msra.mxu1 %v4466_v16  ;;  %3052 = vmatprep.mubr.msk.f32.mxu1 %vm3619_vm0, %v4832_v62 }
 0x28d   :  { %3370 = vmatprep.subr.bf16.mxu1 %v3618_v38 }
 0x290   :  { %3372 = vmatpush3.bf16.msra.mxu1 %v4352_v57  ;;  %v2132_v57 = vmul.f32 %v4436_v55, %v2131_v4 }
 0x291   :  { %3373 = vmatprep.subr.bf16.mxu1 %v3618_v38 }
 0x292   :  { %v2134_v47 = vsel %vm2133_vm1, %v2132_v57, 0.0 }
 0x293   :  { %v2135_v30 = vrot.slane %v2134_v47, 4 }
 0x294   :  { %3375 = vmatpush3.bf16.msra.mxu1 %v4368_v2 }
 0x295   :  { %3376 = vmatprep.subr.bf16.mxu1 %v3618_v38  ;;  %v2136_v2 = vadd.f32 %v2135_v30, %v2134_v47 }
 0x297   :  { %v2137_v6 = vrot.slane %v2136_v2, 2 }
 0x298   :  { %3378 = vmatpush3.bf16.msra.mxu1 %v4381_v8 }
 0x299   :  { %3379 = vmatprep.subr.bf16.mxu1 %v3618_v38  ;;  %v2138_v0 = vadd.f32 %v2137_v6, %v2136_v2 }
 0x29b   :  { %v2139_v8 = vrot.slane %v2138_v0, 1 }
 0x29c   :  { %3381 = vmatpush3.bf16.msra.mxu1 %v4400_v51 }
 0x29d   :  { %3382 = vmatprep.subr.bf16.mxu1 %v3618_v38  ;;  %v2140_v36 = vadd.f32 %v2139_v8, %v2138_v0 }
 0x2a0   :  { %3384 = vmatpush3.bf16.msra.mxu1 %v4417_v41 }
 0x2a1   :  { %3385 = vmatprep.subr.bf16.mxu1 %v3618_v38 }
 0x2a4   :  { %3387 = vmatpush3.bf16.msra.mxu1 %v4428_v37 }
 0x2a5   :  { %3388 = vmatprep.subr.bf16.mxu1 %v3618_v38 }
 0x2a8   :  { %3390 = vmatpush3.bf16.msra.mxu1 %v4455_v48 }
 0x2ab   :  { %3053 = vmatmul.mubr.f32.vlgmr.msra.gmra.mrb[16].mxu1 %v4531_v58 }
 0x37e   :  { %v2127_v54 = vpop.f32.mrb[16].mxu1 }
 0x37f   :  { %v2144_v51 = vand.u32 2147483647, %v2127_v54  ;;  %v3054_v45 = vpop.f32.mrb[17].mxu1  ;;  %v2159_v39 = vadd.f32 %v2140_v36, %v2127_v54  ;;  %v2141_v48 = vmax.f32 %v2127_v54, 0.0  ;;  %vm2142_vm3 = vcmp.ne.f32.partialorder %v2127_v54, %v2127_v54 }
 0x381   :  { %v2145_v38 = vsub.f32 0.0, %v2144_v51 }
 0x383   :  { %v2146_v41 = vmul.f32 1.442695, %v2145_v38 }
 0x385   :  { %3515 = vpow2.f32 %v2146_v41 }
 0x38f   :  { %v3516_v52 = vpop.eup %3515 }
 0x390   :  { %v2148_v27 = vadd.f32 1.0, %v3516_v52  ;;  %v2151_v37 = vmul.f32 -0.5, %v3516_v52  ;;  %v2154_v55 = vand.u32 2147483647, %v3516_v52 }
 0x392   :  { %3517 = vlog2.f32 %v2148_v27  ;;  %v2152_v32 = vadd.f32 1.0, %v2151_v37  ;;  %vm2155_vm2 = vcmp.lt.f32.partialorder %v2154_v55, 0.0004427343 }
 0x394   :  { %v2153_v25 = vmul.f32 %v3516_v52, %v2152_v32 }
 0x39c   :  { %v3518_v3 = vpop.eup %3517 }
 0x39d   :  { %v2150_v22 = vmul.f32 0.6931472, %v3518_v3 }
 0x39f   :  { %v2156_v17 = vsel %vm2155_vm2, %v2153_v25, %v2150_v22 }
 0x3a0   :  { %v2157_v16 = vadd.f32 %v2156_v17, %v2141_v48 }
 0x3a2   :  { %v2158_v18 = vsel %vm2142_vm3, %v2127_v54, %v2157_v16 }
 0x3a3   :  { %v2163_v23 = vmul.f32 %v2161_v60, %v2158_v18 }
 0x3a5   :  { %v2165_v42 = vrot.slane %v2163_v23, 1 }
 0x3a7   :  { %v2167_v43 = vadd.f32 %v2165_v42, %v2159_v39 }
 0x3a9   :  { %2168 = vst [vmem:[#allocation8] sm:$0x1] %v2167_v43 }
 0x3aa   :  { %3596 = shalt.err (!%p3593_p0)
}
 0x3ab   :  { %s3597_s5 = scalar_lea.hbm %s4667_s4, 16 }
 0x3ac   :  { %p3598_p1 = scmp.ne.s32.totalorder %s4667_s4, %s3597_s5  ;;  %p3601_p2 = scmp.lt.u32.totalorder %s3597_s5, %s4667_s4 }
 0x3ae   :  { %p3603_p3 = pnand %p3601_p2, %p3598_p1 }
 0x3b0   :  { %3606 = shalt.err (!%p3603_p3)
}
 0x3b1   :  { %2178 = dma.vmem_to_hbm [thread:$0]  %s2176_s26, 16, %s4667_s4, [#allocation4]  }
 0x3b2   :  { %3611 = dma.done.wait [#allocation4], 16  }
 0x3b3   :  { %3612 = vsyncadd [#allocation4], 4294967280 }
 0x3b4   :  { %2182 = vsyncpa [#allocation3], 1 }
 0x3b5   :  { %2183 = vsyncpa [#allocation6], 1 }
 0x3b6   :  { %2184 = vsyncpa [#allocation4], 1 }

</bundles_post_ra>
